<compile_context>
chip_gen: v7x
topology: tpu7x:2x2x1
jax: 0.10.0
libtpu: 0.0.40
codegen_flags: <defaults>
</compile_context>

<pallas_src>
import functools

import jax
import jax.numpy as jnp
from jax.experimental import pallas as pl
from jax.experimental.pallas import tpu as pltpu


def _round_up(x, m):
    return ((x + m - 1) // m) * m


# ----------------------------------------------------------------------------
# Fused kernel: all GRU layers + FC head in one invocation.
#
# Kernel-side parameter layout (prepared in `prepare_kernel_params`):
#   x2d      : (seq*BP, KP)      padded, time-major flattened input
#   wih_all  : (L, KP, GP)       fused W_ih^T per layer (gates packed r|z|n)
#   whh_all  : (L, H,  GP)       fused W_hh^T per layer (gates packed r|z|n)
#   bi_all   : (L, 1,  GP)       b_ih (all gates) + b_hh (r,z) folded together
#   bhn_all  : (L, 1,  H)        b_hh of the n gate (applied inside r*(...))
#   fc_w     : (H, OP)           padded fc weight (transposed)
#   fc_b     : (1, OP)           padded fc bias
# with GP = round_up(3H, 128): gate g occupies lanes [g*H, (g+1)*H).
# ----------------------------------------------------------------------------
def make_fused_kernel(num_layers, seq_len, b_pad, h):
    unroll = True if seq_len <= 16 else 8   # bound code size / vreg pressure

    def kernel(x_ref, wih_ref, whh_ref, bi_ref, bhn_ref, fcw_ref, fcb_ref,
               out_ref, act_scr, gates_scr):
        for layer in range(num_layers):  # static, small (2)
            # --- Hoisted input->hidden projection for ALL time steps:
            #     one (seq*BP, K) @ (K, GP) MXU matmul, r/z biases folded in.
            if layer == 0:
                src = x_ref[...]                      # (rows, KP)
                w_in = wih_ref[0]                     # (KP, GP)
            else:
                src = act_scr[...]                    # (rows, H)
                w_in = wih_ref[layer][0:h, :]         # (H, GP)
            gates_scr[...] = (
                jnp.dot(src, w_in, preferred_element_type=jnp.float32)
                + bi_ref[layer]
            )

            # Hoist the n-gate hidden bias load + broadcast out of the loop.
            bhn_b = jnp.broadcast_to(bhn_ref[layer], (b_pad, h))
            w_hh = whh_ref[layer]                     # (H, GP)

            # --- Serial recurrence: only h_prev @ W_hh + gate math per step.
            #     h is carried as a register value (no VMEM hidden-state
            #     scratch, single store per step).
            def step(t, h_prev, w_hh=w_hh, bhn_b=bhn_b):
                r0 = pl.multiple_of(t * b_pad, b_pad)
                gi = gates_scr[pl.ds(r0, b_pad), :]               # (BP, GP)
                gh = jnp.dot(h_prev, w_hh,
                             preferred_element_type=jnp.float32)  # (BP, GP)
                r = jax.nn.sigmoid(gi[:, 0:h] + gh[:, 0:h])
                z = jax.nn.sigmoid(gi[:, h:2 * h] + gh[:, h:2 * h])
                n = jnp.tanh(gi[:, 2 * h:3 * h]
                             + r * (gh[:, 2 * h:3 * h] + bhn_b))
                h_new = n + z * (h_prev - n)          # == (1-z)*n + z*h_prev
                # This layer's output (= next layer's input) for time step t.
                act_scr[pl.ds(r0, b_pad), :] = h_new
                return h_new

            h0 = jnp.zeros((b_pad, h), jnp.float32)
            jax.lax.fori_loop(0, seq_len, step, h0, unroll=unroll)

        # --- FC head over all (seq*BP) rows at once, lane-dense 128-wide out.
        out_ref[...] = (
            jnp.dot(act_scr[...], fcw_ref[...],
                    preferred_element_type=jnp.float32)
            + fcb_ref[...]
        ).astype(out_ref.dtype)

    return kernel


# ----------------------------------------------------------------------------
# Parameter preparation: PyTorch-layout params -> fused / packed kernel params.
# ----------------------------------------------------------------------------
def prepare_kernel_params(params, in_dim, hidden_dim, out_dim):
    H = hidden_dim
    KP = max(in_dim, hidden_dim)        # common K so per-layer weights stack
    GP = _round_up(3 * H, 128)          # packed gate width (r|z|n in one block)
    OP = _round_up(out_dim, 128)        # padded output width

    wih_all, whh_all, bi_all, bhn_all = [], [], [], []
    for l, layer in enumerate(params["gru"]):
        layer_in = in_dim if l == 0 else hidden_dim
        wih_t = layer["w_ih"].T                      # (layer_in, 3H), cols r|z|n
        whh_t = layer["w_hh"].T                      # (H, 3H),        cols r|z|n
        b_ih, b_hh = layer["b_ih"], layer["b_hh"]    # (3H,), (3H,)

        Wih = jnp.zeros((KP, GP), jnp.float32).at[:layer_in, :3 * H].set(wih_t)
        Whh = jnp.zeros((H, GP), jnp.float32).at[:, :3 * H].set(whh_t)
        # Fold b_ih (all gates) + b_hh (r, z only) into the hoisted I-term bias.
        bi_fold = jnp.concatenate([b_ih[:2 * H] + b_hh[:2 * H], b_ih[2 * H:]])
        Bi = jnp.zeros((1, GP), jnp.float32).at[0, :3 * H].set(bi_fold)
        Bhn = b_hh[2 * H:3 * H].reshape(1, H).astype(jnp.float32)

        wih_all.append(Wih)
        whh_all.append(Whh)
        bi_all.append(Bi)
        bhn_all.append(Bhn)

    fc_w = jnp.zeros((H, OP), jnp.float32).at[:, :out_dim].set(params["fc_w"].T)
    fc_b = jnp.zeros((1, OP), jnp.float32).at[0, :out_dim].set(params["fc_b"])

    return {
        "wih": jnp.stack(wih_all),   # (L, KP, GP)
        "whh": jnp.stack(whh_all),   # (L, H,  GP)
        "bi": jnp.stack(bi_all),     # (L, 1,  GP)
        "bhn": jnp.stack(bhn_all),   # (L, 1,  H)
        "fc_w": fc_w,                # (H, OP)
        "fc_b": fc_b,                # (1, OP)
    }


# ----------------------------------------------------------------------------
# Forward pass wrapper (mirrors gruModel.forward).
# ----------------------------------------------------------------------------
def gru_model_forward(x, kparams, out_dim):
    seq, batch, in_dim = x.shape
    L, KP, GP = kparams["wih"].shape
    H, OP = kparams["fc_w"].shape
    BP = _round_up(batch, 8)            # pad batch to full 8-sublane tiles
    rows = seq * BP

    # Pad batch -> BP and feature dim -> KP, flatten time-major.
    x_pad = jnp.zeros((seq, BP, KP), jnp.float32).at[:, :batch, :in_dim].set(x)
    x2d = x_pad.reshape(rows, KP)

    flops = (2 * rows * KP * GP * L          # hoisted input projections
             + 2 * seq * L * BP * H * GP     # per-step h @ W_hh
             + 2 * rows * H * OP)            # FC head
    bytes_accessed = 4 * (x2d.size + kparams["wih"].size + kparams["whh"].size
                          + kparams["bi"].size + kparams["bhn"].size
                          + kparams["fc_w"].size + kparams["fc_b"].size
                          + rows * OP)
    cost = pl.CostEstimate(flops=int(flops),
                           transcendentals=int(3 * seq * L * BP * H),
                           bytes_accessed=int(bytes_accessed))

    out2d = pl.pallas_call(
        make_fused_kernel(L, seq, BP, H),
        out_shape=jax.ShapeDtypeStruct((rows, OP), jnp.float32),
        grid=(),
        in_specs=[
            pl.BlockSpec((rows, KP), lambda: (0, 0)),
            pl.BlockSpec((L, KP, GP), lambda: (0, 0, 0)),
            pl.BlockSpec((L, H, GP), lambda: (0, 0, 0)),
            pl.BlockSpec((L, 1, GP), lambda: (0, 0, 0)),
            pl.BlockSpec((L, 1, H), lambda: (0, 0, 0)),
            pl.BlockSpec((H, OP), lambda: (0, 0)),
            pl.BlockSpec((1, OP), lambda: (0, 0)),
        ],
        out_specs=pl.BlockSpec((rows, OP), lambda: (0, 0)),
        scratch_shapes=[
            pltpu.VMEM((rows, H), jnp.float32),    # inter-layer activations
            pltpu.VMEM((rows, GP), jnp.float32),   # hoisted gate pre-activations
        ],
        compiler_params=pltpu.CompilerParams(vmem_limit_bytes=32 * 1024 * 1024),
        cost_estimate=cost,
    )(x2d, kparams["wih"], kparams["whh"], kparams["bi"], kparams["bhn"],
      kparams["fc_w"], kparams["fc_b"])

    return out2d.reshape(seq, BP, OP)[:, :batch, :out_dim]


# ----------------------------------------------------------------------------
# Parameter init in PyTorch nn.GRU / nn.Linear layout (gate order r, z, n).
# ----------------------------------------------------------------------------
def init_params(key, in_dim, hidden_dim, out_dim, hidden_layer):
    bound = 1.0 / float(hidden_dim) ** 0.5
    params = {"gru": []}
    for l in range(hidden_layer):
        layer_in = in_dim if l == 0 else hidden_dim
        key, k1, k2, k3, k4 = jax.random.split(key, 5)
        params["gru"].append({
            "w_ih": jax.random.uniform(k1, (3 * hidden_dim, layer_in), jnp.float32, -bound, bound),
            "w_hh": jax.random.uniform(k2, (3 * hidden_dim, hidden_dim), jnp.float32, -bound, bound),
            "b_ih": jax.random.uniform(k3, (3 * hidden_dim,), jnp.float32, -bound, bound),
            "b_hh": jax.random.uniform(k4, (3 * hidden_dim,), jnp.float32, -bound, bound),
        })
    key, k5, k6 = jax.random.split(key, 3)
    params["fc_w"] = jax.random.uniform(k5, (out_dim, hidden_dim), jnp.float32, -bound, bound)
    params["fc_b"] = jax.random.uniform(k6, (out_dim,), jnp.float32, -bound, bound)
    return params


# Pure-JAX reference on the PyTorch-layout parameters (independent check).
def gru_model_reference(x, params):
    h = x
    H = params["gru"][0]["w_hh"].shape[1]
    for layer in params["gru"]:
        w_ih, w_hh = layer["w_ih"], layer["w_hh"]
        b_ih, b_hh = layer["b_ih"], layer["b_hh"]

        def step(h_prev, x_t):
            gi = x_t @ w_ih.T + b_ih
            gh = h_prev @ w_hh.T + b_hh
            r = jax.nn.sigmoid(gi[:, :H] + gh[:, :H])
            z = jax.nn.sigmoid(gi[:, H:2 * H] + gh[:, H:2 * H])
            n = jnp.tanh(gi[:, 2 * H:] + r * gh[:, 2 * H:])
            h_new = (1.0 - z) * n + z * h_prev
            return h_new, h_new

        h0 = jnp.zeros((x.shape[1], H), jnp.float32)
        _, h = jax.lax.scan(step, h0, h)
    return h @ params["fc_w"].T + params["fc_b"]


if __name__ == "__main__":
    # gruModel(in_dim=16, hidden_dim=32, out_dim=8, hidden_layer=2)
    in_dim, hidden_dim, out_dim, hidden_layer = 16, 32, 8, 2
    seq_len, batch = 8, 2

    key = jax.random.PRNGKey(0)
    key, xkey = jax.random.split(key)
    x = jax.random.normal(xkey, (seq_len, batch, in_dim), jnp.float32)

    params = init_params(key, in_dim, hidden_dim, out_dim, hidden_layer)
    kparams = prepare_kernel_params(params, in_dim, hidden_dim, out_dim)

    fwd = jax.jit(functools.partial(gru_model_forward, out_dim=out_dim))
    out = jax.block_until_ready(fwd(x, kparams))

    ref = gru_model_reference(x, params)
    assert out.shape == (seq_len, batch, out_dim)
    assert jnp.allclose(out, ref, atol=1e-4, rtol=1e-4), float(jnp.max(jnp.abs(out - ref)))

    print("KERNEL_OK")
</pallas_src>

<mosaic_0001>
module attributes {stable_mosaic.version = 11 : i64} {
  func.func @kernel(%arg0: memref<64x32xf32, #tpu.memory_space<vmem>>, %arg1: memref<2x32x128xf32, #tpu.memory_space<vmem>>, %arg2: memref<2x32x128xf32, #tpu.memory_space<vmem>>, %arg3: memref<2x1x128xf32, #tpu.memory_space<vmem>>, %arg4: memref<2x1x32xf32, #tpu.memory_space<vmem>>, %arg5: memref<32x128xf32, #tpu.memory_space<vmem>>, %arg6: memref<1x128xf32, #tpu.memory_space<vmem>>, %arg7: memref<64x128xf32, #tpu.memory_space<vmem>>, %arg8: memref<64x32xf32, #tpu.memory_space<vmem>>, %arg9: memref<64x128xf32, #tpu.memory_space<vmem>>) attributes {dimension_semantics = [], scalar_prefetch = 0 : i64, scratch_operands = 2 : i64, tpu.core_type = #tpu.core_type<tc>} {
    %c0 = arith.constant 0 : index
    %c0_0 = arith.constant 0 : index
    %0 = vector.load %arg0[%c0, %c0_0] : memref<64x32xf32, #tpu.memory_space<vmem>>, vector<64x32xf32>
    %c0_1 = arith.constant 0 : index
    %c0_2 = arith.constant 0 : index
    %c0_3 = arith.constant 0 : index
    %1 = vector.load %arg1[%c0_1, %c0_2, %c0_3] : memref<2x32x128xf32, #tpu.memory_space<vmem>>, vector<1x32x128xf32>
    %2 = vector.shape_cast %1 : vector<1x32x128xf32> to vector<32x128xf32>
    %cst = arith.constant dense<0.000000e+00> : vector<64x128xf32>
    %3 = tpu.matmul %0, %2, %cst {dimension_numbers = #tpu.dot_dimension_numbers<[1], [0], [0], [1], [0, 0, 1, 1], [], []>} : vector<64x32xf32>, vector<32x128xf32>, vector<64x128xf32> -> vector<64x128xf32>
    %c0_4 = arith.constant 0 : index
    %c0_5 = arith.constant 0 : index
    %c0_6 = arith.constant 0 : index
    %4 = vector.load %arg3[%c0_4, %c0_5, %c0_6] : memref<2x1x128xf32, #tpu.memory_space<vmem>>, vector<1x1x128xf32>
    %5 = vector.shape_cast %4 : vector<1x1x128xf32> to vector<1x128xf32>
    %6 = vector.broadcast %5 : vector<1x128xf32> to vector<64x128xf32>
    %7 = arith.addf %3, %6 : vector<64x128xf32>
    %c0_7 = arith.constant 0 : index
    %c0_8 = arith.constant 0 : index
    %8 = vector.load %arg9[%c0_7, %c0_8] : memref<64x128xf32, #tpu.memory_space<vmem>>, vector<64x128xf32>
    tpu.vector_store %arg9[%c0_7, %c0_8], %7 {strides = array<i32>} : memref<64x128xf32, #tpu.memory_space<vmem>>, vector<64x128xf32>,
    %c0_9 = arith.constant 0 : index
    %c0_10 = arith.constant 0 : index
    %c0_11 = arith.constant 0 : index
    %9 = vector.load %arg4[%c0_9, %c0_10, %c0_11] : memref<2x1x32xf32, #tpu.memory_space<vmem>>, vector<1x1x32xf32>
    %10 = vector.shape_cast %9 : vector<1x1x32xf32> to vector<1x32xf32>
    %11 = vector.shape_cast %10 : vector<1x32xf32> to vector<1x32xf32>
    %12 = vector.broadcast %11 : vector<1x32xf32> to vector<8x32xf32>
    %c0_12 = arith.constant 0 : index
    %c0_13 = arith.constant 0 : index
    %c0_14 = arith.constant 0 : index
    %13 = vector.load %arg2[%c0_12, %c0_13, %c0_14] : memref<2x32x128xf32, #tpu.memory_space<vmem>>, vector<1x32x128xf32>
    %14 = vector.shape_cast %13 : vector<1x32x128xf32> to vector<32x128xf32>
    %cst_15 = arith.constant 0.000000e+00 : f32
    %15 = vector.broadcast %cst_15 : f32 to vector<8x32xf32>
    %c0_i32 = arith.constant 0 : i32
    %c8_i32 = arith.constant 8 : i32
    %16 = arith.muli %c0_i32, %c8_i32 : i32
    %17 = tpu.assume_multiple %16, 8 : i32
    %18 = arith.index_cast %17 : i32 to index
    %c0_16 = arith.constant 0 : index
    %19 = vector.load %arg9[%18, %c0_16] : memref<64x128xf32, #tpu.memory_space<vmem>>, vector<8x128xf32>
    %cst_17 = arith.constant dense<0.000000e+00> : vector<8x128xf32>
    %20 = tpu.matmul %15, %14, %cst_17 {dimension_numbers = #tpu.dot_dimension_numbers<[1], [0], [0], [1], [0, 0, 1, 1], [], []>} : vector<8x32xf32>, vector<32x128xf32>, vector<8x128xf32> -> vector<8x128xf32>
    %21 = vector.extract_strided_slice %19 {offsets = [0, 0], sizes = [8, 32], strides = [1, 1]} : vector<8x128xf32> to vector<8x32xf32>
    %22 = vector.extract_strided_slice %20 {offsets = [0, 0], sizes = [8, 32], strides = [1, 1]} : vector<8x128xf32> to vector<8x32xf32>
    %23 = arith.addf %21, %22 : vector<8x32xf32>
    %24 = arith.negf %23 : vector<8x32xf32>
    %25 = math.exp %24 : vector<8x32xf32>
    %cst_18 = arith.constant 1.000000e+00 : f32
    %26 = vector.broadcast %cst_18 : f32 to vector<8x32xf32>
    %27 = arith.addf %26, %25 : vector<8x32xf32>
    %28 = arith.divf %26, %27 : vector<8x32xf32>
    %29 = vector.extract_strided_slice %19 {offsets = [0, 32], sizes = [8, 32], strides = [1, 1]} : vector<8x128xf32> to vector<8x32xf32>
    %30 = vector.extract_strided_slice %20 {offsets = [0, 32], sizes = [8, 32], strides = [1, 1]} : vector<8x128xf32> to vector<8x32xf32>
    %31 = arith.addf %29, %30 : vector<8x32xf32>
    %32 = arith.negf %31 : vector<8x32xf32>
    %33 = math.exp %32 : vector<8x32xf32>
    %cst_19 = arith.constant 1.000000e+00 : f32
    %34 = vector.broadcast %cst_19 : f32 to vector<8x32xf32>
    %35 = arith.addf %34, %33 : vector<8x32xf32>
    %36 = arith.divf %34, %35 : vector<8x32xf32>
    %37 = vector.extract_strided_slice %19 {offsets = [0, 64], sizes = [8, 32], strides = [1, 1]} : vector<8x128xf32> to vector<8x32xf32>
    %38 = vector.extract_strided_slice %20 {offsets = [0, 64], sizes = [8, 32], strides = [1, 1]} : vector<8x128xf32> to vector<8x32xf32>
    %39 = arith.addf %38, %12 : vector<8x32xf32>
    %40 = arith.mulf %28, %39 : vector<8x32xf32>
    %41 = arith.addf %37, %40 : vector<8x32xf32>
    %42 = math.tanh %41 : vector<8x32xf32>
    %43 = arith.subf %15, %42 : vector<8x32xf32>
    %44 = arith.mulf %36, %43 : vector<8x32xf32>
    %45 = arith.addf %42, %44 : vector<8x32xf32>
    %46 = arith.index_cast %17 : i32 to index
    %c0_20 = arith.constant 0 : index
    %47 = vector.load %arg8[%46, %c0_20] : memref<64x32xf32, #tpu.memory_space<vmem>>, vector<8x32xf32>
    tpu.vector_store %arg8[%46, %c0_20], %45 {strides = array<i32>} : memref<64x32xf32, #tpu.memory_space<vmem>>, vector<8x32xf32>,
    %c1_i32 = arith.constant 1 : i32
    %c8_i32_21 = arith.constant 8 : i32
    %48 = arith.muli %c1_i32, %c8_i32_21 : i32
    %49 = tpu.assume_multiple %48, 8 : i32
    %50 = arith.index_cast %49 : i32 to index
    %c0_22 = arith.constant 0 : index
    %51 = vector.load %arg9[%50, %c0_22] : memref<64x128xf32, #tpu.memory_space<vmem>>, vector<8x128xf32>
    %cst_23 = arith.constant dense<0.000000e+00> : vector<8x128xf32>
    %52 = tpu.matmul %45, %14, %cst_23 {dimension_numbers = #tpu.dot_dimension_numbers<[1], [0], [0], [1], [0, 0, 1, 1], [], []>} : vector<8x32xf32>, vector<32x128xf32>, vector<8x128xf32> -> vector<8x128xf32>
    %53 = vector.extract_strided_slice %51 {offsets = [0, 0], sizes = [8, 32], strides = [1, 1]} : vector<8x128xf32> to vector<8x32xf32>
    %54 = vector.extract_strided_slice %52 {offsets = [0, 0], sizes = [8, 32], strides = [1, 1]} : vector<8x128xf32> to vector<8x32xf32>
    %55 = arith.addf %53, %54 : vector<8x32xf32>
    %56 = arith.negf %55 : vector<8x32xf32>
    %57 = math.exp %56 : vector<8x32xf32>
    %cst_24 = arith.constant 1.000000e+00 : f32
    %58 = vector.broadcast %cst_24 : f32 to vector<8x32xf32>
    %59 = arith.addf %58, %57 : vector<8x32xf32>
    %60 = arith.divf %58, %59 : vector<8x32xf32>
    %61 = vector.extract_strided_slice %51 {offsets = [0, 32], sizes = [8, 32], strides = [1, 1]} : vector<8x128xf32> to vector<8x32xf32>
    %62 = vector.extract_strided_slice %52 {offsets = [0, 32], sizes = [8, 32], strides = [1, 1]} : vector<8x128xf32> to vector<8x32xf32>
    %63 = arith.addf %61, %62 : vector<8x32xf32>
    %64 = arith.negf %63 : vector<8x32xf32>
    %65 = math.exp %64 : vector<8x32xf32>
    %cst_25 = arith.constant 1.000000e+00 : f32
    %66 = vector.broadcast %cst_25 : f32 to vector<8x32xf32>
    %67 = arith.addf %66, %65 : vector<8x32xf32>
    %68 = arith.divf %66, %67 : vector<8x32xf32>
    %69 = vector.extract_strided_slice %51 {offsets = [0, 64], sizes = [8, 32], strides = [1, 1]} : vector<8x128xf32> to vector<8x32xf32>
    %70 = vector.extract_strided_slice %52 {offsets = [0, 64], sizes = [8, 32], strides = [1, 1]} : vector<8x128xf32> to vector<8x32xf32>
    %71 = arith.addf %70, %12 : vector<8x32xf32>
    %72 = arith.mulf %60, %71 : vector<8x32xf32>
    %73 = arith.addf %69, %72 : vector<8x32xf32>
    %74 = math.tanh %73 : vector<8x32xf32>
    %75 = arith.subf %45, %74 : vector<8x32xf32>
    %76 = arith.mulf %68, %75 : vector<8x32xf32>
    %77 = arith.addf %74, %76 : vector<8x32xf32>
    %78 = arith.index_cast %49 : i32 to index
    %c0_26 = arith.constant 0 : index
    %79 = vector.load %arg8[%78, %c0_26] : memref<64x32xf32, #tpu.memory_space<vmem>>, vector<8x32xf32>
    tpu.vector_store %arg8[%78, %c0_26], %77 {strides = array<i32>} : memref<64x32xf32, #tpu.memory_space<vmem>>, vector<8x32xf32>,
    %c2_i32 = arith.constant 2 : i32
    %c8_i32_27 = arith.constant 8 : i32
    %80 = arith.muli %c2_i32, %c8_i32_27 : i32
    %81 = tpu.assume_multiple %80, 8 : i32
    %82 = arith.index_cast %81 : i32 to index
    %c0_28 = arith.constant 0 : index
    %83 = vector.load %arg9[%82, %c0_28] : memref<64x128xf32, #tpu.memory_space<vmem>>, vector<8x128xf32>
    %cst_29 = arith.constant dense<0.000000e+00> : vector<8x128xf32>
    %84 = tpu.matmul %77, %14, %cst_29 {dimension_numbers = #tpu.dot_dimension_numbers<[1], [0], [0], [1], [0, 0, 1, 1], [], []>} : vector<8x32xf32>, vector<32x128xf32>, vector<8x128xf32> -> vector<8x128xf32>
    %85 = vector.extract_strided_slice %83 {offsets = [0, 0], sizes = [8, 32], strides = [1, 1]} : vector<8x128xf32> to vector<8x32xf32>
    %86 = vector.extract_strided_slice %84 {offsets = [0, 0], sizes = [8, 32], strides = [1, 1]} : vector<8x128xf32> to vector<8x32xf32>
    %87 = arith.addf %85, %86 : vector<8x32xf32>
    %88 = arith.negf %87 : vector<8x32xf32>
    %89 = math.exp %88 : vector<8x32xf32>
    %cst_30 = arith.constant 1.000000e+00 : f32
    %90 = vector.broadcast %cst_30 : f32 to vector<8x32xf32>
    %91 = arith.addf %90, %89 : vector<8x32xf32>
    %92 = arith.divf %90, %91 : vector<8x32xf32>
    %93 = vector.extract_strided_slice %83 {offsets = [0, 32], sizes = [8, 32], strides = [1, 1]} : vector<8x128xf32> to vector<8x32xf32>
    %94 = vector.extract_strided_slice %84 {offsets = [0, 32], sizes = [8, 32], strides = [1, 1]} : vector<8x128xf32> to vector<8x32xf32>
    %95 = arith.addf %93, %94 : vector<8x32xf32>
    %96 = arith.negf %95 : vector<8x32xf32>
    %97 = math.exp %96 : vector<8x32xf32>
    %cst_31 = arith.constant 1.000000e+00 : f32
    %98 = vector.broadcast %cst_31 : f32 to vector<8x32xf32>
    %99 = arith.addf %98, %97 : vector<8x32xf32>
    %100 = arith.divf %98, %99 : vector<8x32xf32>
    %101 = vector.extract_strided_slice %83 {offsets = [0, 64], sizes = [8, 32], strides = [1, 1]} : vector<8x128xf32> to vector<8x32xf32>
    %102 = vector.extract_strided_slice %84 {offsets = [0, 64], sizes = [8, 32], strides = [1, 1]} : vector<8x128xf32> to vector<8x32xf32>
    %103 = arith.addf %102, %12 : vector<8x32xf32>
    %104 = arith.mulf %92, %103 : vector<8x32xf32>
    %105 = arith.addf %101, %104 : vector<8x32xf32>
    %106 = math.tanh %105 : vector<8x32xf32>
    %107 = arith.subf %77, %106 : vector<8x32xf32>
    %108 = arith.mulf %100, %107 : vector<8x32xf32>
    %109 = arith.addf %106, %108 : vector<8x32xf32>
    %110 = arith.index_cast %81 : i32 to index
    %c0_32 = arith.constant 0 : index
    %111 = vector.load %arg8[%110, %c0_32] : memref<64x32xf32, #tpu.memory_space<vmem>>, vector<8x32xf32>
    tpu.vector_store %arg8[%110, %c0_32], %109 {strides = array<i32>} : memref<64x32xf32, #tpu.memory_space<vmem>>, vector<8x32xf32>,
    %c3_i32 = arith.constant 3 : i32
    %c8_i32_33 = arith.constant 8 : i32
    %112 = arith.muli %c3_i32, %c8_i32_33 : i32
    %113 = tpu.assume_multiple %112, 8 : i32
    %114 = arith.index_cast %113 : i32 to index
    %c0_34 = arith.constant 0 : index
    %115 = vector.load %arg9[%114, %c0_34] : memref<64x128xf32, #tpu.memory_space<vmem>>, vector<8x128xf32>
    %cst_35 = arith.constant dense<0.000000e+00> : vector<8x128xf32>
    %116 = tpu.matmul %109, %14, %cst_35 {dimension_numbers = #tpu.dot_dimension_numbers<[1], [0], [0], [1], [0, 0, 1, 1], [], []>} : vector<8x32xf32>, vector<32x128xf32>, vector<8x128xf32> -> vector<8x128xf32>
    %117 = vector.extract_strided_slice %115 {offsets = [0, 0], sizes = [8, 32], strides = [1, 1]} : vector<8x128xf32> to vector<8x32xf32>
    %118 = vector.extract_strided_slice %116 {offsets = [0, 0], sizes = [8, 32], strides = [1, 1]} : vector<8x128xf32> to vector<8x32xf32>
    %119 = arith.addf %117, %118 : vector<8x32xf32>
    %120 = arith.negf %119 : vector<8x32xf32>
    %121 = math.exp %120 : vector<8x32xf32>
    %cst_36 = arith.constant 1.000000e+00 : f32
    %122 = vector.broadcast %cst_36 : f32 to vector<8x32xf32>
    %123 = arith.addf %122, %121 : vector<8x32xf32>
    %124 = arith.divf %122, %123 : vector<8x32xf32>
    %125 = vector.extract_strided_slice %115 {offsets = [0, 32], sizes = [8, 32], strides = [1, 1]} : vector<8x128xf32> to vector<8x32xf32>
    %126 = vector.extract_strided_slice %116 {offsets = [0, 32], sizes = [8, 32], strides = [1, 1]} : vector<8x128xf32> to vector<8x32xf32>
    %127 = arith.addf %125, %126 : vector<8x32xf32>
    %128 = arith.negf %127 : vector<8x32xf32>
    %129 = math.exp %128 : vector<8x32xf32>
    %cst_37 = arith.constant 1.000000e+00 : f32
    %130 = vector.broadcast %cst_37 : f32 to vector<8x32xf32>
    %131 = arith.addf %130, %129 : vector<8x32xf32>
    %132 = arith.divf %130, %131 : vector<8x32xf32>
    %133 = vector.extract_strided_slice %115 {offsets = [0, 64], sizes = [8, 32], strides = [1, 1]} : vector<8x128xf32> to vector<8x32xf32>
    %134 = vector.extract_strided_slice %116 {offsets = [0, 64], sizes = [8, 32], strides = [1, 1]} : vector<8x128xf32> to vector<8x32xf32>
    %135 = arith.addf %134, %12 : vector<8x32xf32>
    %136 = arith.mulf %124, %135 : vector<8x32xf32>
    %137 = arith.addf %133, %136 : vector<8x32xf32>
    %138 = math.tanh %137 : vector<8x32xf32>
    %139 = arith.subf %109, %138 : vector<8x32xf32>
    %140 = arith.mulf %132, %139 : vector<8x32xf32>
    %141 = arith.addf %138, %140 : vector<8x32xf32>
    %142 = arith.index_cast %113 : i32 to index
    %c0_38 = arith.constant 0 : index
    %143 = vector.load %arg8[%142, %c0_38] : memref<64x32xf32, #tpu.memory_space<vmem>>, vector<8x32xf32>
    tpu.vector_store %arg8[%142, %c0_38], %141 {strides = array<i32>} : memref<64x32xf32, #tpu.memory_space<vmem>>, vector<8x32xf32>,
    %c4_i32 = arith.constant 4 : i32
    %c8_i32_39 = arith.constant 8 : i32
    %144 = arith.muli %c4_i32, %c8_i32_39 : i32
    %145 = tpu.assume_multiple %144, 8 : i32
    %146 = arith.index_cast %145 : i32 to index
    %c0_40 = arith.constant 0 : index
    %147 = vector.load %arg9[%146, %c0_40] : memref<64x128xf32, #tpu.memory_space<vmem>>, vector<8x128xf32>
    %cst_41 = arith.constant dense<0.000000e+00> : vector<8x128xf32>
    %148 = tpu.matmul %141, %14, %cst_41 {dimension_numbers = #tpu.dot_dimension_numbers<[1], [0], [0], [1], [0, 0, 1, 1], [], []>} : vector<8x32xf32>, vector<32x128xf32>, vector<8x128xf32> -> vector<8x128xf32>
    %149 = vector.extract_strided_slice %147 {offsets = [0, 0], sizes = [8, 32], strides = [1, 1]} : vector<8x128xf32> to vector<8x32xf32>
    %150 = vector.extract_strided_slice %148 {offsets = [0, 0], sizes = [8, 32], strides = [1, 1]} : vector<8x128xf32> to vector<8x32xf32>
    %151 = arith.addf %149, %150 : vector<8x32xf32>
    %152 = arith.negf %151 : vector<8x32xf32>
    %153 = math.exp %152 : vector<8x32xf32>
    %cst_42 = arith.constant 1.000000e+00 : f32
    %154 = vector.broadcast %cst_42 : f32 to vector<8x32xf32>
    %155 = arith.addf %154, %153 : vector<8x32xf32>
    %156 = arith.divf %154, %155 : vector<8x32xf32>
    %157 = vector.extract_strided_slice %147 {offsets = [0, 32], sizes = [8, 32], strides = [1, 1]} : vector<8x128xf32> to vector<8x32xf32>
    %158 = vector.extract_strided_slice %148 {offsets = [0, 32], sizes = [8, 32], strides = [1, 1]} : vector<8x128xf32> to vector<8x32xf32>
    %159 = arith.addf %157, %158 : vector<8x32xf32>
    %160 = arith.negf %159 : vector<8x32xf32>
    %161 = math.exp %160 : vector<8x32xf32>
    %cst_43 = arith.constant 1.000000e+00 : f32
    %162 = vector.broadcast %cst_43 : f32 to vector<8x32xf32>
    %163 = arith.addf %162, %161 : vector<8x32xf32>
    %164 = arith.divf %162, %163 : vector<8x32xf32>
    %165 = vector.extract_strided_slice %147 {offsets = [0, 64], sizes = [8, 32], strides = [1, 1]} : vector<8x128xf32> to vector<8x32xf32>
    %166 = vector.extract_strided_slice %148 {offsets = [0, 64], sizes = [8, 32], strides = [1, 1]} : vector<8x128xf32> to vector<8x32xf32>
    %167 = arith.addf %166, %12 : vector<8x32xf32>
    %168 = arith.mulf %156, %167 : vector<8x32xf32>
    %169 = arith.addf %165, %168 : vector<8x32xf32>
    %170 = math.tanh %169 : vector<8x32xf32>
    %171 = arith.subf %141, %170 : vector<8x32xf32>
    %172 = arith.mulf %164, %171 : vector<8x32xf32>
    %173 = arith.addf %170, %172 : vector<8x32xf32>
    %174 = arith.index_cast %145 : i32 to index
    %c0_44 = arith.constant 0 : index
    %175 = vector.load %arg8[%174, %c0_44] : memref<64x32xf32, #tpu.memory_space<vmem>>, vector<8x32xf32>
    tpu.vector_store %arg8[%174, %c0_44], %173 {strides = array<i32>} : memref<64x32xf32, #tpu.memory_space<vmem>>, vector<8x32xf32>,
    %c5_i32 = arith.constant 5 : i32
    %c8_i32_45 = arith.constant 8 : i32
    %176 = arith.muli %c5_i32, %c8_i32_45 : i32
    %177 = tpu.assume_multiple %176, 8 : i32
    %178 = arith.index_cast %177 : i32 to index
    %c0_46 = arith.constant 0 : index
    %179 = vector.load %arg9[%178, %c0_46] : memref<64x128xf32, #tpu.memory_space<vmem>>, vector<8x128xf32>
    %cst_47 = arith.constant dense<0.000000e+00> : vector<8x128xf32>
    %180 = tpu.matmul %173, %14, %cst_47 {dimension_numbers = #tpu.dot_dimension_numbers<[1], [0], [0], [1], [0, 0, 1, 1], [], []>} : vector<8x32xf32>, vector<32x128xf32>, vector<8x128xf32> -> vector<8x128xf32>
    %181 = vector.extract_strided_slice %179 {offsets = [0, 0], sizes = [8, 32], strides = [1, 1]} : vector<8x128xf32> to vector<8x32xf32>
    %182 = vector.extract_strided_slice %180 {offsets = [0, 0], sizes = [8, 32], strides = [1, 1]} : vector<8x128xf32> to vector<8x32xf32>
    %183 = arith.addf %181, %182 : vector<8x32xf32>
    %184 = arith.negf %183 : vector<8x32xf32>
    %185 = math.exp %184 : vector<8x32xf32>
    %cst_48 = arith.constant 1.000000e+00 : f32
    %186 = vector.broadcast %cst_48 : f32 to vector<8x32xf32>
    %187 = arith.addf %186, %185 : vector<8x32xf32>
    %188 = arith.divf %186, %187 : vector<8x32xf32>
    %189 = vector.extract_strided_slice %179 {offsets = [0, 32], sizes = [8, 32], strides = [1, 1]} : vector<8x128xf32> to vector<8x32xf32>
    %190 = vector.extract_strided_slice %180 {offsets = [0, 32], sizes = [8, 32], strides = [1, 1]} : vector<8x128xf32> to vector<8x32xf32>
    %191 = arith.addf %189, %190 : vector<8x32xf32>
    %192 = arith.negf %191 : vector<8x32xf32>
    %193 = math.exp %192 : vector<8x32xf32>
    %cst_49 = arith.constant 1.000000e+00 : f32
    %194 = vector.broadcast %cst_49 : f32 to vector<8x32xf32>
    %195 = arith.addf %194, %193 : vector<8x32xf32>
    %196 = arith.divf %194, %195 : vector<8x32xf32>
    %197 = vector.extract_strided_slice %179 {offsets = [0, 64], sizes = [8, 32], strides = [1, 1]} : vector<8x128xf32> to vector<8x32xf32>
    %198 = vector.extract_strided_slice %180 {offsets = [0, 64], sizes = [8, 32], strides = [1, 1]} : vector<8x128xf32> to vector<8x32xf32>
    %199 = arith.addf %198, %12 : vector<8x32xf32>
    %200 = arith.mulf %188, %199 : vector<8x32xf32>
    %201 = arith.addf %197, %200 : vector<8x32xf32>
    %202 = math.tanh %201 : vector<8x32xf32>
    %203 = arith.subf %173, %202 : vector<8x32xf32>
    %204 = arith.mulf %196, %203 : vector<8x32xf32>
    %205 = arith.addf %202, %204 : vector<8x32xf32>
    %206 = arith.index_cast %177 : i32 to index
    %c0_50 = arith.constant 0 : index
    %207 = vector.load %arg8[%206, %c0_50] : memref<64x32xf32, #tpu.memory_space<vmem>>, vector<8x32xf32>
    tpu.vector_store %arg8[%206, %c0_50], %205 {strides = array<i32>} : memref<64x32xf32, #tpu.memory_space<vmem>>, vector<8x32xf32>,
    %c6_i32 = arith.constant 6 : i32
    %c8_i32_51 = arith.constant 8 : i32
    %208 = arith.muli %c6_i32, %c8_i32_51 : i32
    %209 = tpu.assume_multiple %208, 8 : i32
    %210 = arith.index_cast %209 : i32 to index
    %c0_52 = arith.constant 0 : index
    %211 = vector.load %arg9[%210, %c0_52] : memref<64x128xf32, #tpu.memory_space<vmem>>, vector<8x128xf32>
    %cst_53 = arith.constant dense<0.000000e+00> : vector<8x128xf32>
    %212 = tpu.matmul %205, %14, %cst_53 {dimension_numbers = #tpu.dot_dimension_numbers<[1], [0], [0], [1], [0, 0, 1, 1], [], []>} : vector<8x32xf32>, vector<32x128xf32>, vector<8x128xf32> -> vector<8x128xf32>
    %213 = vector.extract_strided_slice %211 {offsets = [0, 0], sizes = [8, 32], strides = [1, 1]} : vector<8x128xf32> to vector<8x32xf32>
    %214 = vector.extract_strided_slice %212 {offsets = [0, 0], sizes = [8, 32], strides = [1, 1]} : vector<8x128xf32> to vector<8x32xf32>
    %215 = arith.addf %213, %214 : vector<8x32xf32>
    %216 = arith.negf %215 : vector<8x32xf32>
    %217 = math.exp %216 : vector<8x32xf32>
    %cst_54 = arith.constant 1.000000e+00 : f32
    %218 = vector.broadcast %cst_54 : f32 to vector<8x32xf32>
    %219 = arith.addf %218, %217 : vector<8x32xf32>
    %220 = arith.divf %218, %219 : vector<8x32xf32>
    %221 = vector.extract_strided_slice %211 {offsets = [0, 32], sizes = [8, 32], strides = [1, 1]} : vector<8x128xf32> to vector<8x32xf32>
    %222 = vector.extract_strided_slice %212 {offsets = [0, 32], sizes = [8, 32], strides = [1, 1]} : vector<8x128xf32> to vector<8x32xf32>
    %223 = arith.addf %221, %222 : vector<8x32xf32>
    %224 = arith.negf %223 : vector<8x32xf32>
    %225 = math.exp %224 : vector<8x32xf32>
    %cst_55 = arith.constant 1.000000e+00 : f32
    %226 = vector.broadcast %cst_55 : f32 to vector<8x32xf32>
    %227 = arith.addf %226, %225 : vector<8x32xf32>
    %228 = arith.divf %226, %227 : vector<8x32xf32>
    %229 = vector.extract_strided_slice %211 {offsets = [0, 64], sizes = [8, 32], strides = [1, 1]} : vector<8x128xf32> to vector<8x32xf32>
    %230 = vector.extract_strided_slice %212 {offsets = [0, 64], sizes = [8, 32], strides = [1, 1]} : vector<8x128xf32> to vector<8x32xf32>
    %231 = arith.addf %230, %12 : vector<8x32xf32>
    %232 = arith.mulf %220, %231 : vector<8x32xf32>
    %233 = arith.addf %229, %232 : vector<8x32xf32>
    %234 = math.tanh %233 : vector<8x32xf32>
    %235 = arith.subf %205, %234 : vector<8x32xf32>
    %236 = arith.mulf %228, %235 : vector<8x32xf32>
    %237 = arith.addf %234, %236 : vector<8x32xf32>
    %238 = arith.index_cast %209 : i32 to index
    %c0_56 = arith.constant 0 : index
    %239 = vector.load %arg8[%238, %c0_56] : memref<64x32xf32, #tpu.memory_space<vmem>>, vector<8x32xf32>
    tpu.vector_store %arg8[%238, %c0_56], %237 {strides = array<i32>} : memref<64x32xf32, #tpu.memory_space<vmem>>, vector<8x32xf32>,
    %c7_i32 = arith.constant 7 : i32
    %c8_i32_57 = arith.constant 8 : i32
    %240 = arith.muli %c7_i32, %c8_i32_57 : i32
    %241 = tpu.assume_multiple %240, 8 : i32
    %242 = arith.index_cast %241 : i32 to index
    %c0_58 = arith.constant 0 : index
    %243 = vector.load %arg9[%242, %c0_58] : memref<64x128xf32, #tpu.memory_space<vmem>>, vector<8x128xf32>
    %cst_59 = arith.constant dense<0.000000e+00> : vector<8x128xf32>
    %244 = tpu.matmul %237, %14, %cst_59 {dimension_numbers = #tpu.dot_dimension_numbers<[1], [0], [0], [1], [0, 0, 1, 1], [], []>} : vector<8x32xf32>, vector<32x128xf32>, vector<8x128xf32> -> vector<8x128xf32>
    %245 = vector.extract_strided_slice %243 {offsets = [0, 0], sizes = [8, 32], strides = [1, 1]} : vector<8x128xf32> to vector<8x32xf32>
    %246 = vector.extract_strided_slice %244 {offsets = [0, 0], sizes = [8, 32], strides = [1, 1]} : vector<8x128xf32> to vector<8x32xf32>
    %247 = arith.addf %245, %246 : vector<8x32xf32>
    %248 = arith.negf %247 : vector<8x32xf32>
    %249 = math.exp %248 : vector<8x32xf32>
    %cst_60 = arith.constant 1.000000e+00 : f32
    %250 = vector.broadcast %cst_60 : f32 to vector<8x32xf32>
    %251 = arith.addf %250, %249 : vector<8x32xf32>
    %252 = arith.divf %250, %251 : vector<8x32xf32>
    %253 = vector.extract_strided_slice %243 {offsets = [0, 32], sizes = [8, 32], strides = [1, 1]} : vector<8x128xf32> to vector<8x32xf32>
    %254 = vector.extract_strided_slice %244 {offsets = [0, 32], sizes = [8, 32], strides = [1, 1]} : vector<8x128xf32> to vector<8x32xf32>
    %255 = arith.addf %253, %254 : vector<8x32xf32>
    %256 = arith.negf %255 : vector<8x32xf32>
    %257 = math.exp %256 : vector<8x32xf32>
    %cst_61 = arith.constant 1.000000e+00 : f32
    %258 = vector.broadcast %cst_61 : f32 to vector<8x32xf32>
    %259 = arith.addf %258, %257 : vector<8x32xf32>
    %260 = arith.divf %258, %259 : vector<8x32xf32>
    %261 = vector.extract_strided_slice %243 {offsets = [0, 64], sizes = [8, 32], strides = [1, 1]} : vector<8x128xf32> to vector<8x32xf32>
    %262 = vector.extract_strided_slice %244 {offsets = [0, 64], sizes = [8, 32], strides = [1, 1]} : vector<8x128xf32> to vector<8x32xf32>
    %263 = arith.addf %262, %12 : vector<8x32xf32>
    %264 = arith.mulf %252, %263 : vector<8x32xf32>
    %265 = arith.addf %261, %264 : vector<8x32xf32>
    %266 = math.tanh %265 : vector<8x32xf32>
    %267 = arith.subf %237, %266 : vector<8x32xf32>
    %268 = arith.mulf %260, %267 : vector<8x32xf32>
    %269 = arith.addf %266, %268 : vector<8x32xf32>
    %270 = arith.index_cast %241 : i32 to index
    %c0_62 = arith.constant 0 : index
    %271 = vector.load %arg8[%270, %c0_62] : memref<64x32xf32, #tpu.memory_space<vmem>>, vector<8x32xf32>
    tpu.vector_store %arg8[%270, %c0_62], %269 {strides = array<i32>} : memref<64x32xf32, #tpu.memory_space<vmem>>, vector<8x32xf32>,
    %c8_i32_63 = arith.constant 8 : i32
    %c0_64 = arith.constant 0 : index
    %c0_65 = arith.constant 0 : index
    %272 = vector.load %arg8[%c0_64, %c0_65] : memref<64x32xf32, #tpu.memory_space<vmem>>, vector<64x32xf32>
    %c1 = arith.constant 1 : index
    %c0_66 = arith.constant 0 : index
    %c0_67 = arith.constant 0 : index
    %273 = vector.load %arg1[%c1, %c0_66, %c0_67] : memref<2x32x128xf32, #tpu.memory_space<vmem>>, vector<1x32x128xf32>
    %274 = vector.shape_cast %273 : vector<1x32x128xf32> to vector<32x128xf32>
    %cst_68 = arith.constant dense<0.000000e+00> : vector<64x128xf32>
    %275 = tpu.matmul %272, %274, %cst_68 {dimension_numbers = #tpu.dot_dimension_numbers<[1], [0], [0], [1], [0, 0, 1, 1], [], []>} : vector<64x32xf32>, vector<32x128xf32>, vector<64x128xf32> -> vector<64x128xf32>
    %c1_69 = arith.constant 1 : index
    %c0_70 = arith.constant 0 : index
    %c0_71 = arith.constant 0 : index
    %276 = vector.load %arg3[%c1_69, %c0_70, %c0_71] : memref<2x1x128xf32, #tpu.memory_space<vmem>>, vector<1x1x128xf32>
    %277 = vector.shape_cast %276 : vector<1x1x128xf32> to vector<1x128xf32>
    %278 = vector.broadcast %277 : vector<1x128xf32> to vector<64x128xf32>
    %279 = arith.addf %275, %278 : vector<64x128xf32>
    %c0_72 = arith.constant 0 : index
    %c0_73 = arith.constant 0 : index
    %280 = vector.load %arg9[%c0_72, %c0_73] : memref<64x128xf32, #tpu.memory_space<vmem>>, vector<64x128xf32>
    tpu.vector_store %arg9[%c0_72, %c0_73], %279 {strides = array<i32>} : memref<64x128xf32, #tpu.memory_space<vmem>>, vector<64x128xf32>,
    %c1_74 = arith.constant 1 : index
    %c0_75 = arith.constant 0 : index
    %c0_76 = arith.constant 0 : index
    %281 = vector.load %arg4[%c1_74, %c0_75, %c0_76] : memref<2x1x32xf32, #tpu.memory_space<vmem>>, vector<1x1x32xf32>
    %282 = vector.shape_cast %281 : vector<1x1x32xf32> to vector<1x32xf32>
    %283 = vector.shape_cast %282 : vector<1x32xf32> to vector<1x32xf32>
    %284 = vector.broadcast %283 : vector<1x32xf32> to vector<8x32xf32>
    %c1_77 = arith.constant 1 : index
    %c0_78 = arith.constant 0 : index
    %c0_79 = arith.constant 0 : index
    %285 = vector.load %arg2[%c1_77, %c0_78, %c0_79] : memref<2x32x128xf32, #tpu.memory_space<vmem>>, vector<1x32x128xf32>
    %286 = vector.shape_cast %285 : vector<1x32x128xf32> to vector<32x128xf32>
    %cst_80 = arith.constant 0.000000e+00 : f32
    %287 = vector.broadcast %cst_80 : f32 to vector<8x32xf32>
    %c0_i32_81 = arith.constant 0 : i32
    %c8_i32_82 = arith.constant 8 : i32
    %288 = arith.muli %c0_i32_81, %c8_i32_82 : i32
    %289 = tpu.assume_multiple %288, 8 : i32
    %290 = arith.index_cast %289 : i32 to index
    %c0_83 = arith.constant 0 : index
    %291 = vector.load %arg9[%290, %c0_83] : memref<64x128xf32, #tpu.memory_space<vmem>>, vector<8x128xf32>
    %cst_84 = arith.constant dense<0.000000e+00> : vector<8x128xf32>
    %292 = tpu.matmul %287, %286, %cst_84 {dimension_numbers = #tpu.dot_dimension_numbers<[1], [0], [0], [1], [0, 0, 1, 1], [], []>} : vector<8x32xf32>, vector<32x128xf32>, vector<8x128xf32> -> vector<8x128xf32>
    %293 = vector.extract_strided_slice %291 {offsets = [0, 0], sizes = [8, 32], strides = [1, 1]} : vector<8x128xf32> to vector<8x32xf32>
    %294 = vector.extract_strided_slice %292 {offsets = [0, 0], sizes = [8, 32], strides = [1, 1]} : vector<8x128xf32> to vector<8x32xf32>
    %295 = arith.addf %293, %294 : vector<8x32xf32>
    %296 = arith.negf %295 : vector<8x32xf32>
    %297 = math.exp %296 : vector<8x32xf32>
    %cst_85 = arith.constant 1.000000e+00 : f32
    %298 = vector.broadcast %cst_85 : f32 to vector<8x32xf32>
    %299 = arith.addf %298, %297 : vector<8x32xf32>
    %300 = arith.divf %298, %299 : vector<8x32xf32>
    %301 = vector.extract_strided_slice %291 {offsets = [0, 32], sizes = [8, 32], strides = [1, 1]} : vector<8x128xf32> to vector<8x32xf32>
    %302 = vector.extract_strided_slice %292 {offsets = [0, 32], sizes = [8, 32], strides = [1, 1]} : vector<8x128xf32> to vector<8x32xf32>
    %303 = arith.addf %301, %302 : vector<8x32xf32>
    %304 = arith.negf %303 : vector<8x32xf32>
    %305 = math.exp %304 : vector<8x32xf32>
    %cst_86 = arith.constant 1.000000e+00 : f32
    %306 = vector.broadcast %cst_86 : f32 to vector<8x32xf32>
    %307 = arith.addf %306, %305 : vector<8x32xf32>
    %308 = arith.divf %306, %307 : vector<8x32xf32>
    %309 = vector.extract_strided_slice %291 {offsets = [0, 64], sizes = [8, 32], strides = [1, 1]} : vector<8x128xf32> to vector<8x32xf32>
    %310 = vector.extract_strided_slice %292 {offsets = [0, 64], sizes = [8, 32], strides = [1, 1]} : vector<8x128xf32> to vector<8x32xf32>
    %311 = arith.addf %310, %284 : vector<8x32xf32>
    %312 = arith.mulf %300, %311 : vector<8x32xf32>
    %313 = arith.addf %309, %312 : vector<8x32xf32>
    %314 = math.tanh %313 : vector<8x32xf32>
    %315 = arith.subf %287, %314 : vector<8x32xf32>
    %316 = arith.mulf %308, %315 : vector<8x32xf32>
    %317 = arith.addf %314, %316 : vector<8x32xf32>
    %318 = arith.index_cast %289 : i32 to index
    %c0_87 = arith.constant 0 : index
    %319 = vector.load %arg8[%318, %c0_87] : memref<64x32xf32, #tpu.memory_space<vmem>>, vector<8x32xf32>
    tpu.vector_store %arg8[%318, %c0_87], %317 {strides = array<i32>} : memref<64x32xf32, #tpu.memory_space<vmem>>, vector<8x32xf32>,
    %c1_i32_88 = arith.constant 1 : i32
    %c8_i32_89 = arith.constant 8 : i32
    %320 = arith.muli %c1_i32_88, %c8_i32_89 : i32
    %321 = tpu.assume_multiple %320, 8 : i32
    %322 = arith.index_cast %321 : i32 to index
    %c0_90 = arith.constant 0 : index
    %323 = vector.load %arg9[%322, %c0_90] : memref<64x128xf32, #tpu.memory_space<vmem>>, vector<8x128xf32>
    %cst_91 = arith.constant dense<0.000000e+00> : vector<8x128xf32>
    %324 = tpu.matmul %317, %286, %cst_91 {dimension_numbers = #tpu.dot_dimension_numbers<[1], [0], [0], [1], [0, 0, 1, 1], [], []>} : vector<8x32xf32>, vector<32x128xf32>, vector<8x128xf32> -> vector<8x128xf32>
    %325 = vector.extract_strided_slice %323 {offsets = [0, 0], sizes = [8, 32], strides = [1, 1]} : vector<8x128xf32> to vector<8x32xf32>
    %326 = vector.extract_strided_slice %324 {offsets = [0, 0], sizes = [8, 32], strides = [1, 1]} : vector<8x128xf32> to vector<8x32xf32>
    %327 = arith.addf %325, %326 : vector<8x32xf32>
    %328 = arith.negf %327 : vector<8x32xf32>
    %329 = math.exp %328 : vector<8x32xf32>
    %cst_92 = arith.constant 1.000000e+00 : f32
    %330 = vector.broadcast %cst_92 : f32 to vector<8x32xf32>
    %331 = arith.addf %330, %329 : vector<8x32xf32>
    %332 = arith.divf %330, %331 : vector<8x32xf32>
    %333 = vector.extract_strided_slice %323 {offsets = [0, 32], sizes = [8, 32], strides = [1, 1]} : vector<8x128xf32> to vector<8x32xf32>
    %334 = vector.extract_strided_slice %324 {offsets = [0, 32], sizes = [8, 32], strides = [1, 1]} : vector<8x128xf32> to vector<8x32xf32>
    %335 = arith.addf %333, %334 : vector<8x32xf32>
    %336 = arith.negf %335 : vector<8x32xf32>
    %337 = math.exp %336 : vector<8x32xf32>
    %cst_93 = arith.constant 1.000000e+00 : f32
    %338 = vector.broadcast %cst_93 : f32 to vector<8x32xf32>
    %339 = arith.addf %338, %337 : vector<8x32xf32>
    %340 = arith.divf %338, %339 : vector<8x32xf32>
    %341 = vector.extract_strided_slice %323 {offsets = [0, 64], sizes = [8, 32], strides = [1, 1]} : vector<8x128xf32> to vector<8x32xf32>
    %342 = vector.extract_strided_slice %324 {offsets = [0, 64], sizes = [8, 32], strides = [1, 1]} : vector<8x128xf32> to vector<8x32xf32>
    %343 = arith.addf %342, %284 : vector<8x32xf32>
    %344 = arith.mulf %332, %343 : vector<8x32xf32>
    %345 = arith.addf %341, %344 : vector<8x32xf32>
    %346 = math.tanh %345 : vector<8x32xf32>
    %347 = arith.subf %317, %346 : vector<8x32xf32>
    %348 = arith.mulf %340, %347 : vector<8x32xf32>
    %349 = arith.addf %346, %348 : vector<8x32xf32>
    %350 = arith.index_cast %321 : i32 to index
    %c0_94 = arith.constant 0 : index
    %351 = vector.load %arg8[%350, %c0_94] : memref<64x32xf32, #tpu.memory_space<vmem>>, vector<8x32xf32>
    tpu.vector_store %arg8[%350, %c0_94], %349 {strides = array<i32>} : memref<64x32xf32, #tpu.memory_space<vmem>>, vector<8x32xf32>,
    %c2_i32_95 = arith.constant 2 : i32
    %c8_i32_96 = arith.constant 8 : i32
    %352 = arith.muli %c2_i32_95, %c8_i32_96 : i32
    %353 = tpu.assume_multiple %352, 8 : i32
    %354 = arith.index_cast %353 : i32 to index
    %c0_97 = arith.constant 0 : index
    %355 = vector.load %arg9[%354, %c0_97] : memref<64x128xf32, #tpu.memory_space<vmem>>, vector<8x128xf32>
    %cst_98 = arith.constant dense<0.000000e+00> : vector<8x128xf32>
    %356 = tpu.matmul %349, %286, %cst_98 {dimension_numbers = #tpu.dot_dimension_numbers<[1], [0], [0], [1], [0, 0, 1, 1], [], []>} : vector<8x32xf32>, vector<32x128xf32>, vector<8x128xf32> -> vector<8x128xf32>
    %357 = vector.extract_strided_slice %355 {offsets = [0, 0], sizes = [8, 32], strides = [1, 1]} : vector<8x128xf32> to vector<8x32xf32>
    %358 = vector.extract_strided_slice %356 {offsets = [0, 0], sizes = [8, 32], strides = [1, 1]} : vector<8x128xf32> to vector<8x32xf32>
    %359 = arith.addf %357, %358 : vector<8x32xf32>
    %360 = arith.negf %359 : vector<8x32xf32>
    %361 = math.exp %360 : vector<8x32xf32>
    %cst_99 = arith.constant 1.000000e+00 : f32
    %362 = vector.broadcast %cst_99 : f32 to vector<8x32xf32>
    %363 = arith.addf %362, %361 : vector<8x32xf32>
    %364 = arith.divf %362, %363 : vector<8x32xf32>
    %365 = vector.extract_strided_slice %355 {offsets = [0, 32], sizes = [8, 32], strides = [1, 1]} : vector<8x128xf32> to vector<8x32xf32>
    %366 = vector.extract_strided_slice %356 {offsets = [0, 32], sizes = [8, 32], strides = [1, 1]} : vector<8x128xf32> to vector<8x32xf32>
    %367 = arith.addf %365, %366 : vector<8x32xf32>
    %368 = arith.negf %367 : vector<8x32xf32>
    %369 = math.exp %368 : vector<8x32xf32>
    %cst_100 = arith.constant 1.000000e+00 : f32
    %370 = vector.broadcast %cst_100 : f32 to vector<8x32xf32>
    %371 = arith.addf %370, %369 : vector<8x32xf32>
    %372 = arith.divf %370, %371 : vector<8x32xf32>
    %373 = vector.extract_strided_slice %355 {offsets = [0, 64], sizes = [8, 32], strides = [1, 1]} : vector<8x128xf32> to vector<8x32xf32>
    %374 = vector.extract_strided_slice %356 {offsets = [0, 64], sizes = [8, 32], strides = [1, 1]} : vector<8x128xf32> to vector<8x32xf32>
    %375 = arith.addf %374, %284 : vector<8x32xf32>
    %376 = arith.mulf %364, %375 : vector<8x32xf32>
    %377 = arith.addf %373, %376 : vector<8x32xf32>
    %378 = math.tanh %377 : vector<8x32xf32>
    %379 = arith.subf %349, %378 : vector<8x32xf32>
    %380 = arith.mulf %372, %379 : vector<8x32xf32>
    %381 = arith.addf %378, %380 : vector<8x32xf32>
    %382 = arith.index_cast %353 : i32 to index
    %c0_101 = arith.constant 0 : index
    %383 = vector.load %arg8[%382, %c0_101] : memref<64x32xf32, #tpu.memory_space<vmem>>, vector<8x32xf32>
    tpu.vector_store %arg8[%382, %c0_101], %381 {strides = array<i32>} : memref<64x32xf32, #tpu.memory_space<vmem>>, vector<8x32xf32>,
    %c3_i32_102 = arith.constant 3 : i32
    %c8_i32_103 = arith.constant 8 : i32
    %384 = arith.muli %c3_i32_102, %c8_i32_103 : i32
    %385 = tpu.assume_multiple %384, 8 : i32
    %386 = arith.index_cast %385 : i32 to index
    %c0_104 = arith.constant 0 : index
    %387 = vector.load %arg9[%386, %c0_104] : memref<64x128xf32, #tpu.memory_space<vmem>>, vector<8x128xf32>
    %cst_105 = arith.constant dense<0.000000e+00> : vector<8x128xf32>
    %388 = tpu.matmul %381, %286, %cst_105 {dimension_numbers = #tpu.dot_dimension_numbers<[1], [0], [0], [1], [0, 0, 1, 1], [], []>} : vector<8x32xf32>, vector<32x128xf32>, vector<8x128xf32> -> vector<8x128xf32>
    %389 = vector.extract_strided_slice %387 {offsets = [0, 0], sizes = [8, 32], strides = [1, 1]} : vector<8x128xf32> to vector<8x32xf32>
    %390 = vector.extract_strided_slice %388 {offsets = [0, 0], sizes = [8, 32], strides = [1, 1]} : vector<8x128xf32> to vector<8x32xf32>
    %391 = arith.addf %389, %390 : vector<8x32xf32>
    %392 = arith.negf %391 : vector<8x32xf32>
    %393 = math.exp %392 : vector<8x32xf32>
    %cst_106 = arith.constant 1.000000e+00 : f32
    %394 = vector.broadcast %cst_106 : f32 to vector<8x32xf32>
    %395 = arith.addf %394, %393 : vector<8x32xf32>
    %396 = arith.divf %394, %395 : vector<8x32xf32>
    %397 = vector.extract_strided_slice %387 {offsets = [0, 32], sizes = [8, 32], strides = [1, 1]} : vector<8x128xf32> to vector<8x32xf32>
    %398 = vector.extract_strided_slice %388 {offsets = [0, 32], sizes = [8, 32], strides = [1, 1]} : vector<8x128xf32> to vector<8x32xf32>
    %399 = arith.addf %397, %398 : vector<8x32xf32>
    %400 = arith.negf %399 : vector<8x32xf32>
    %401 = math.exp %400 : vector<8x32xf32>
    %cst_107 = arith.constant 1.000000e+00 : f32
    %402 = vector.broadcast %cst_107 : f32 to vector<8x32xf32>
    %403 = arith.addf %402, %401 : vector<8x32xf32>
    %404 = arith.divf %402, %403 : vector<8x32xf32>
    %405 = vector.extract_strided_slice %387 {offsets = [0, 64], sizes = [8, 32], strides = [1, 1]} : vector<8x128xf32> to vector<8x32xf32>
    %406 = vector.extract_strided_slice %388 {offsets = [0, 64], sizes = [8, 32], strides = [1, 1]} : vector<8x128xf32> to vector<8x32xf32>
    %407 = arith.addf %406, %284 : vector<8x32xf32>
    %408 = arith.mulf %396, %407 : vector<8x32xf32>
    %409 = arith.addf %405, %408 : vector<8x32xf32>
    %410 = math.tanh %409 : vector<8x32xf32>
    %411 = arith.subf %381, %410 : vector<8x32xf32>
    %412 = arith.mulf %404, %411 : vector<8x32xf32>
    %413 = arith.addf %410, %412 : vector<8x32xf32>
    %414 = arith.index_cast %385 : i32 to index
    %c0_108 = arith.constant 0 : index
    %415 = vector.load %arg8[%414, %c0_108] : memref<64x32xf32, #tpu.memory_space<vmem>>, vector<8x32xf32>
    tpu.vector_store %arg8[%414, %c0_108], %413 {strides = array<i32>} : memref<64x32xf32, #tpu.memory_space<vmem>>, vector<8x32xf32>,
    %c4_i32_109 = arith.constant 4 : i32
    %c8_i32_110 = arith.constant 8 : i32
    %416 = arith.muli %c4_i32_109, %c8_i32_110 : i32
    %417 = tpu.assume_multiple %416, 8 : i32
    %418 = arith.index_cast %417 : i32 to index
    %c0_111 = arith.constant 0 : index
    %419 = vector.load %arg9[%418, %c0_111] : memref<64x128xf32, #tpu.memory_space<vmem>>, vector<8x128xf32>
    %cst_112 = arith.constant dense<0.000000e+00> : vector<8x128xf32>
    %420 = tpu.matmul %413, %286, %cst_112 {dimension_numbers = #tpu.dot_dimension_numbers<[1], [0], [0], [1], [0, 0, 1, 1], [], []>} : vector<8x32xf32>, vector<32x128xf32>, vector<8x128xf32> -> vector<8x128xf32>
    %421 = vector.extract_strided_slice %419 {offsets = [0, 0], sizes = [8, 32], strides = [1, 1]} : vector<8x128xf32> to vector<8x32xf32>
    %422 = vector.extract_strided_slice %420 {offsets = [0, 0], sizes = [8, 32], strides = [1, 1]} : vector<8x128xf32> to vector<8x32xf32>
    %423 = arith.addf %421, %422 : vector<8x32xf32>
    %424 = arith.negf %423 : vector<8x32xf32>
    %425 = math.exp %424 : vector<8x32xf32>
    %cst_113 = arith.constant 1.000000e+00 : f32
    %426 = vector.broadcast %cst_113 : f32 to vector<8x32xf32>
    %427 = arith.addf %426, %425 : vector<8x32xf32>
    %428 = arith.divf %426, %427 : vector<8x32xf32>
    %429 = vector.extract_strided_slice %419 {offsets = [0, 32], sizes = [8, 32], strides = [1, 1]} : vector<8x128xf32> to vector<8x32xf32>
    %430 = vector.extract_strided_slice %420 {offsets = [0, 32], sizes = [8, 32], strides = [1, 1]} : vector<8x128xf32> to vector<8x32xf32>
    %431 = arith.addf %429, %430 : vector<8x32xf32>
    %432 = arith.negf %431 : vector<8x32xf32>
    %433 = math.exp %432 : vector<8x32xf32>
    %cst_114 = arith.constant 1.000000e+00 : f32
    %434 = vector.broadcast %cst_114 : f32 to vector<8x32xf32>
    %435 = arith.addf %434, %433 : vector<8x32xf32>
    %436 = arith.divf %434, %435 : vector<8x32xf32>
    %437 = vector.extract_strided_slice %419 {offsets = [0, 64], sizes = [8, 32], strides = [1, 1]} : vector<8x128xf32> to vector<8x32xf32>
    %438 = vector.extract_strided_slice %420 {offsets = [0, 64], sizes = [8, 32], strides = [1, 1]} : vector<8x128xf32> to vector<8x32xf32>
    %439 = arith.addf %438, %284 : vector<8x32xf32>
    %440 = arith.mulf %428, %439 : vector<8x32xf32>
    %441 = arith.addf %437, %440 : vector<8x32xf32>
    %442 = math.tanh %441 : vector<8x32xf32>
    %443 = arith.subf %413, %442 : vector<8x32xf32>
    %444 = arith.mulf %436, %443 : vector<8x32xf32>
    %445 = arith.addf %442, %444 : vector<8x32xf32>
    %446 = arith.index_cast %417 : i32 to index
    %c0_115 = arith.constant 0 : index
    %447 = vector.load %arg8[%446, %c0_115] : memref<64x32xf32, #tpu.memory_space<vmem>>, vector<8x32xf32>
    tpu.vector_store %arg8[%446, %c0_115], %445 {strides = array<i32>} : memref<64x32xf32, #tpu.memory_space<vmem>>, vector<8x32xf32>,
    %c5_i32_116 = arith.constant 5 : i32
    %c8_i32_117 = arith.constant 8 : i32
    %448 = arith.muli %c5_i32_116, %c8_i32_117 : i32
    %449 = tpu.assume_multiple %448, 8 : i32
    %450 = arith.index_cast %449 : i32 to index
    %c0_118 = arith.constant 0 : index
    %451 = vector.load %arg9[%450, %c0_118] : memref<64x128xf32, #tpu.memory_space<vmem>>, vector<8x128xf32>
    %cst_119 = arith.constant dense<0.000000e+00> : vector<8x128xf32>
    %452 = tpu.matmul %445, %286, %cst_119 {dimension_numbers = #tpu.dot_dimension_numbers<[1], [0], [0], [1], [0, 0, 1, 1], [], []>} : vector<8x32xf32>, vector<32x128xf32>, vector<8x128xf32> -> vector<8x128xf32>
    %453 = vector.extract_strided_slice %451 {offsets = [0, 0], sizes = [8, 32], strides = [1, 1]} : vector<8x128xf32> to vector<8x32xf32>
    %454 = vector.extract_strided_slice %452 {offsets = [0, 0], sizes = [8, 32], strides = [1, 1]} : vector<8x128xf32> to vector<8x32xf32>
    %455 = arith.addf %453, %454 : vector<8x32xf32>
    %456 = arith.negf %455 : vector<8x32xf32>
    %457 = math.exp %456 : vector<8x32xf32>
    %cst_120 = arith.constant 1.000000e+00 : f32
    %458 = vector.broadcast %cst_120 : f32 to vector<8x32xf32>
    %459 = arith.addf %458, %457 : vector<8x32xf32>
    %460 = arith.divf %458, %459 : vector<8x32xf32>
    %461 = vector.extract_strided_slice %451 {offsets = [0, 32], sizes = [8, 32], strides = [1, 1]} : vector<8x128xf32> to vector<8x32xf32>
    %462 = vector.extract_strided_slice %452 {offsets = [0, 32], sizes = [8, 32], strides = [1, 1]} : vector<8x128xf32> to vector<8x32xf32>
    %463 = arith.addf %461, %462 : vector<8x32xf32>
    %464 = arith.negf %463 : vector<8x32xf32>
    %465 = math.exp %464 : vector<8x32xf32>
    %cst_121 = arith.constant 1.000000e+00 : f32
    %466 = vector.broadcast %cst_121 : f32 to vector<8x32xf32>
    %467 = arith.addf %466, %465 : vector<8x32xf32>
    %468 = arith.divf %466, %467 : vector<8x32xf32>
    %469 = vector.extract_strided_slice %451 {offsets = [0, 64], sizes = [8, 32], strides = [1, 1]} : vector<8x128xf32> to vector<8x32xf32>
    %470 = vector.extract_strided_slice %452 {offsets = [0, 64], sizes = [8, 32], strides = [1, 1]} : vector<8x128xf32> to vector<8x32xf32>
    %471 = arith.addf %470, %284 : vector<8x32xf32>
    %472 = arith.mulf %460, %471 : vector<8x32xf32>
    %473 = arith.addf %469, %472 : vector<8x32xf32>
    %474 = math.tanh %473 : vector<8x32xf32>
    %475 = arith.subf %445, %474 : vector<8x32xf32>
    %476 = arith.mulf %468, %475 : vector<8x32xf32>
    %477 = arith.addf %474, %476 : vector<8x32xf32>
    %478 = arith.index_cast %449 : i32 to index
    %c0_122 = arith.constant 0 : index
    %479 = vector.load %arg8[%478, %c0_122] : memref<64x32xf32, #tpu.memory_space<vmem>>, vector<8x32xf32>
    tpu.vector_store %arg8[%478, %c0_122], %477 {strides = array<i32>} : memref<64x32xf32, #tpu.memory_space<vmem>>, vector<8x32xf32>,
    %c6_i32_123 = arith.constant 6 : i32
    %c8_i32_124 = arith.constant 8 : i32
    %480 = arith.muli %c6_i32_123, %c8_i32_124 : i32
    %481 = tpu.assume_multiple %480, 8 : i32
    %482 = arith.index_cast %481 : i32 to index
    %c0_125 = arith.constant 0 : index
    %483 = vector.load %arg9[%482, %c0_125] : memref<64x128xf32, #tpu.memory_space<vmem>>, vector<8x128xf32>
    %cst_126 = arith.constant dense<0.000000e+00> : vector<8x128xf32>
    %484 = tpu.matmul %477, %286, %cst_126 {dimension_numbers = #tpu.dot_dimension_numbers<[1], [0], [0], [1], [0, 0, 1, 1], [], []>} : vector<8x32xf32>, vector<32x128xf32>, vector<8x128xf32> -> vector<8x128xf32>
    %485 = vector.extract_strided_slice %483 {offsets = [0, 0], sizes = [8, 32], strides = [1, 1]} : vector<8x128xf32> to vector<8x32xf32>
    %486 = vector.extract_strided_slice %484 {offsets = [0, 0], sizes = [8, 32], strides = [1, 1]} : vector<8x128xf32> to vector<8x32xf32>
    %487 = arith.addf %485, %486 : vector<8x32xf32>
    %488 = arith.negf %487 : vector<8x32xf32>
    %489 = math.exp %488 : vector<8x32xf32>
    %cst_127 = arith.constant 1.000000e+00 : f32
    %490 = vector.broadcast %cst_127 : f32 to vector<8x32xf32>
    %491 = arith.addf %490, %489 : vector<8x32xf32>
    %492 = arith.divf %490, %491 : vector<8x32xf32>
    %493 = vector.extract_strided_slice %483 {offsets = [0, 32], sizes = [8, 32], strides = [1, 1]} : vector<8x128xf32> to vector<8x32xf32>
    %494 = vector.extract_strided_slice %484 {offsets = [0, 32], sizes = [8, 32], strides = [1, 1]} : vector<8x128xf32> to vector<8x32xf32>
    %495 = arith.addf %493, %494 : vector<8x32xf32>
    %496 = arith.negf %495 : vector<8x32xf32>
    %497 = math.exp %496 : vector<8x32xf32>
    %cst_128 = arith.constant 1.000000e+00 : f32
    %498 = vector.broadcast %cst_128 : f32 to vector<8x32xf32>
    %499 = arith.addf %498, %497 : vector<8x32xf32>
    %500 = arith.divf %498, %499 : vector<8x32xf32>
    %501 = vector.extract_strided_slice %483 {offsets = [0, 64], sizes = [8, 32], strides = [1, 1]} : vector<8x128xf32> to vector<8x32xf32>
    %502 = vector.extract_strided_slice %484 {offsets = [0, 64], sizes = [8, 32], strides = [1, 1]} : vector<8x128xf32> to vector<8x32xf32>
    %503 = arith.addf %502, %284 : vector<8x32xf32>
    %504 = arith.mulf %492, %503 : vector<8x32xf32>
    %505 = arith.addf %501, %504 : vector<8x32xf32>
    %506 = math.tanh %505 : vector<8x32xf32>
    %507 = arith.subf %477, %506 : vector<8x32xf32>
    %508 = arith.mulf %500, %507 : vector<8x32xf32>
    %509 = arith.addf %506, %508 : vector<8x32xf32>
    %510 = arith.index_cast %481 : i32 to index
    %c0_129 = arith.constant 0 : index
    %511 = vector.load %arg8[%510, %c0_129] : memref<64x32xf32, #tpu.memory_space<vmem>>, vector<8x32xf32>
    tpu.vector_store %arg8[%510, %c0_129], %509 {strides = array<i32>} : memref<64x32xf32, #tpu.memory_space<vmem>>, vector<8x32xf32>,
    %c7_i32_130 = arith.constant 7 : i32
    %c8_i32_131 = arith.constant 8 : i32
    %512 = arith.muli %c7_i32_130, %c8_i32_131 : i32
    %513 = tpu.assume_multiple %512, 8 : i32
    %514 = arith.index_cast %513 : i32 to index
    %c0_132 = arith.constant 0 : index
    %515 = vector.load %arg9[%514, %c0_132] : memref<64x128xf32, #tpu.memory_space<vmem>>, vector<8x128xf32>
    %cst_133 = arith.constant dense<0.000000e+00> : vector<8x128xf32>
    %516 = tpu.matmul %509, %286, %cst_133 {dimension_numbers = #tpu.dot_dimension_numbers<[1], [0], [0], [1], [0, 0, 1, 1], [], []>} : vector<8x32xf32>, vector<32x128xf32>, vector<8x128xf32> -> vector<8x128xf32>
    %517 = vector.extract_strided_slice %515 {offsets = [0, 0], sizes = [8, 32], strides = [1, 1]} : vector<8x128xf32> to vector<8x32xf32>
    %518 = vector.extract_strided_slice %516 {offsets = [0, 0], sizes = [8, 32], strides = [1, 1]} : vector<8x128xf32> to vector<8x32xf32>
    %519 = arith.addf %517, %518 : vector<8x32xf32>
    %520 = arith.negf %519 : vector<8x32xf32>
    %521 = math.exp %520 : vector<8x32xf32>
    %cst_134 = arith.constant 1.000000e+00 : f32
    %522 = vector.broadcast %cst_134 : f32 to vector<8x32xf32>
    %523 = arith.addf %522, %521 : vector<8x32xf32>
    %524 = arith.divf %522, %523 : vector<8x32xf32>
    %525 = vector.extract_strided_slice %515 {offsets = [0, 32], sizes = [8, 32], strides = [1, 1]} : vector<8x128xf32> to vector<8x32xf32>
    %526 = vector.extract_strided_slice %516 {offsets = [0, 32], sizes = [8, 32], strides = [1, 1]} : vector<8x128xf32> to vector<8x32xf32>
    %527 = arith.addf %525, %526 : vector<8x32xf32>
    %528 = arith.negf %527 : vector<8x32xf32>
    %529 = math.exp %528 : vector<8x32xf32>
    %cst_135 = arith.constant 1.000000e+00 : f32
    %530 = vector.broadcast %cst_135 : f32 to vector<8x32xf32>
    %531 = arith.addf %530, %529 : vector<8x32xf32>
    %532 = arith.divf %530, %531 : vector<8x32xf32>
    %533 = vector.extract_strided_slice %515 {offsets = [0, 64], sizes = [8, 32], strides = [1, 1]} : vector<8x128xf32> to vector<8x32xf32>
    %534 = vector.extract_strided_slice %516 {offsets = [0, 64], sizes = [8, 32], strides = [1, 1]} : vector<8x128xf32> to vector<8x32xf32>
    %535 = arith.addf %534, %284 : vector<8x32xf32>
    %536 = arith.mulf %524, %535 : vector<8x32xf32>
    %537 = arith.addf %533, %536 : vector<8x32xf32>
    %538 = math.tanh %537 : vector<8x32xf32>
    %539 = arith.subf %509, %538 : vector<8x32xf32>
    %540 = arith.mulf %532, %539 : vector<8x32xf32>
    %541 = arith.addf %538, %540 : vector<8x32xf32>
    %542 = arith.index_cast %513 : i32 to index
    %c0_136 = arith.constant 0 : index
    %543 = vector.load %arg8[%542, %c0_136] : memref<64x32xf32, #tpu.memory_space<vmem>>, vector<8x32xf32>
    tpu.vector_store %arg8[%542, %c0_136], %541 {strides = array<i32>} : memref<64x32xf32, #tpu.memory_space<vmem>>, vector<8x32xf32>,
    %c8_i32_137 = arith.constant 8 : i32
    %c0_138 = arith.constant 0 : index
    %c0_139 = arith.constant 0 : index
    %544 = vector.load %arg8[%c0_138, %c0_139] : memref<64x32xf32, #tpu.memory_space<vmem>>, vector<64x32xf32>
    %c0_140 = arith.constant 0 : index
    %c0_141 = arith.constant 0 : index
    %545 = vector.load %arg5[%c0_140, %c0_141] : memref<32x128xf32, #tpu.memory_space<vmem>>, vector<32x128xf32>
    %cst_142 = arith.constant dense<0.000000e+00> : vector<64x128xf32>
    %546 = tpu.matmul %544, %545, %cst_142 {dimension_numbers = #tpu.dot_dimension_numbers<[1], [0], [0], [1], [0, 0, 1, 1], [], []>} : vector<64x32xf32>, vector<32x128xf32>, vector<64x128xf32> -> vector<64x128xf32>
    %c0_143 = arith.constant 0 : index
    %c0_144 = arith.constant 0 : index
    %547 = vector.load %arg6[%c0_143, %c0_144] : memref<1x128xf32, #tpu.memory_space<vmem>>, vector<1x128xf32>
    %548 = vector.broadcast %547 : vector<1x128xf32> to vector<64x128xf32>
    %549 = arith.addf %546, %548 : vector<64x128xf32>
    %c0_145 = arith.constant 0 : index
    %c0_146 = arith.constant 0 : index
    %550 = vector.load %arg7[%c0_145, %c0_146] : memref<64x128xf32, #tpu.memory_space<vmem>>, vector<64x128xf32>
    tpu.vector_store %arg7[%c0_145, %c0_146], %549 {strides = array<i32>} : memref<64x128xf32, #tpu.memory_space<vmem>>, vector<64x128xf32>,
    return
  }
}

</mosaic_0001>

<bundles_post_ra>
// kernel: gru_model_forward.1
= control target key start
LH: loop header
LB: loop body
LE: loop exit
PB: predicated region body
PF: predicated region fallthrough
CT: control target
= control target key end

     0   :  { %12 = vsyncpa [#allocation5], 0  ;;  %s2955_s24 = smov [#allocation4]   ;;  %s3447_s0 = inlined_call_operand.vmem [shape: f32[64,32], index: 0, kind: input, shape index: {}]   ;;  %s3448_s1 = inlined_call_operand.vmem [shape: f32[2,32,128], index: 1, kind: input, shape index: {}]   ;;  %s3449_s2 = inlined_call_operand.hbm [shape: f32[2,32,128], index: 2, kind: input, shape index: {}]   ;;  %s3450_s3 = inlined_call_operand.vmem [shape: f32[2,1,128], index: 3, kind: input, shape index: {}]   ;;  %s3451_s4 = inlined_call_operand.vmem [shape: f32[2,1,32], index: 4, kind: input, shape index: {}]   ;;  %s3452_s5 = inlined_call_operand.vmem [shape: f32[32,128], index: 5, kind: input, shape index: {}]   ;;  %s3453_s6 = inlined_call_operand.vmem [shape: f32[1,128], index: 6, kind: input, shape index: {}]   ;;  %s3454_s7 = inlined_call_operand.vmem [shape: f32[64,128], index: 7, kind: output, shape index: {}]  }
   0x1   :  { %s22_s25 = sshll.u32 %s2955_s24, 4  ;;  %s2931_s28 = scalar_lea.hbm %s3449_s2, 1024  ;;  %s23_s25 = int_to_ptr.vmem [resolvable:$true] %s22_s25 }
   0x2   :  { %p2932_p0 = scmp.ne.s32.totalorder %s3449_s2, %s2931_s28  ;;  %p2935_p1 = scmp.lt.u32.totalorder %s2931_s28, %s3449_s2 }
   0x4   :  { %p2937_p2 = pnand %p2935_p1, %p2932_p0 }
   0x6   :  { %2940 = shalt.err (!%p2937_p2)
}
   0x7   :  { %s2941_s10 = scalar_lea.vmem %s23_s25, 1024  ;;  %p2946_p4 = scmp.lt.s32.totalorder %s23_s25, %s23_s25 }
   0x8   :  { %p2942_p3 = scmp.ne.s32.totalorder %s23_s25, %s2941_s10  ;;  %p2947_p5 = scmp.lt.s32.totalorder %s2941_s10, %s2941_s10 }
   0xa   :  { %p2948_p6 = por %p2947_p5, %p2946_p4 }
   0xc   :  { %p2949_p7 = pnand %p2948_p6, %p2942_p3 }
   0xe   :  { %2952 = shalt.err (!%p2949_p7)
}
   0xf   :  { %s2956_s11 = smov 128   ;;  %s2957_s12 = smov 8  }
  0x10   :  { %28 = dma.hbm_to_vmem [thread:$0]  %s3449_s2, 1024, %s23_s25, [#allocation5], %s2956_s11, %s2956_s11, %s2957_s12  }
  0x11   :  { %2953 = dma.done.wait [#allocation5], 1024  }
  0x12   :  { %2954 = vsyncadd [#allocation5], 4294966272  ;;  %vm59_vm0 = vcmask 261120   ;;  %v48_v0 = vld [vmem:[%s3448_s1] sm:$0xff]  ;;  %v49_v1 = vld [vmem:[%s3448_s1 + $0x8] sm:$0xff]  ;;  %s2958_s28 = smov 64  }
  0x13   :  { %v50_v2 = vld [vmem:[%s3448_s1 + $0x10] sm:$0xff]  ;;  %v2702_v3 = vpack.c.bf16 %v49_v1, %v48_v0  ;;  %v51_v4 = vld [vmem:[%s3448_s1 + $0x18] sm:$0xff]  ;;  %v44_v5 = vld [vmem:[%s3447_s0 + $0x20] sm:$0xff]  ;;  %v2959_v14 = vmov 0.0|0.0   ;;  %vm2960_vm1 = vmmov 0   ;;  %v2961_v20 = vmov 0.0  }
  0x14   :  { %v2706_v6 = vpack.c.bf16 %v51_v4, %v50_v2  ;;  %2480 = vmatprep.mubr.msk.f32.mxu1 %vm59_vm0, %v44_v5  ;;  %v40_v7 = vld [vmem:[%s3447_s0] sm:$0xff]  ;;  %v204_v10 = vld [vmem:[#allocation4 + $0x8] sm:$0xff]  ;;  %v46_v15 = vld [vmem:[%s3447_s0 + $0x30] sm:$0xff]  ;;  %s2962_s16 = smov 96   ;;  %s2963_s17 = smov 32  }
  0x15   :  { %2822 = vmatprep.subr.bf16.mxu1 %v2702_v3  ;;  %2703 = vmatprep.subr.bf16.mxu0 %v2702_v3  ;;  %v2294_v8 = vld [vmem:[%s3451_s4] ss:$0 sm:$0xff]  ;;  %v45_v11 = vld [vmem:[%s3447_s0 + $0x28] sm:$0xff]  ;;  %v205_v16 = vld [vmem:[#allocation4 + $0x10] sm:$0xff] }
  0x16   :  { %2824 = vmatpush3.bf16.msra.mxu1 %v2702_v3  ;;  %2705 = vmatpush3.bf16.msra.mxu0 %v2702_v3  ;;  %v203_v9 = vld [vmem:[#allocation4] sm:$0xff]  ;;  %v41_v13 = vld [vmem:[%s3447_s0 + $0x8] sm:$0xff]  ;;  %v206_v17 = vld [vmem:[#allocation4 + $0x18] sm:$0xff] }
  0x17   :  { %2823 = vmatprep.subr.bf16.mxu1 %v2706_v6  ;;  %2707 = vmatprep.subr.bf16.mxu0 %v2706_v6  ;;  %v3043_v12 = vpack.c.bf16 %v204_v10, %v203_v9  ;;  %v47_v18 = vld [vmem:[%s3447_s0 + $0x38] sm:$0xff]  ;;  %v3060_v19 = vpack.c.bf16 %v206_v17, %v205_v16  ;;  %v3094_v31 = vld [vmem:[%s3450_s3] ss:$0 sm:$0xff]  ;;  %v42_v0 = vld [vmem:[%s3447_s0 + $0x10] sm:$0xff] }
  0x18   :  { %2474 = vmatprep.mubr.msk.f32.mxu0 %vm59_vm0, %v40_v7  ;;  %288 = vrot.lane.b32.xlu0 %v2294_v8, %s2958_s28  ;;  %v43_v1 = vld [vmem:[%s3447_s0 + $0x18] sm:$0xff] }
  0x1a   :  { %2825 = vmatpush3.bf16.msra.mxu1 %v2706_v6  ;;  %2709 = vmatpush3.bf16.msra.mxu0 %v2706_v6 }
  0x1b   :  { %2710 = vmatprep.subr.bf16.mxu1 %v2959_v14  ;;  %2722 = vmatprep.subr.bf16.mxu0 %v2959_v14 }
  0x1d   :  { %2481 = vmatmul.mubr.msk.f32.vlgmr.msra.gmra.mrb[0].mxu1 %vm59_vm0, %v45_v11  ;;  %2475 = vmatmul.mubr.msk.f32.vlgmr.msra.gmra.mrb[0].mxu0 %vm59_vm0, %v41_v13 }
  0x1e   :  { %2712 = vmatpush3.bf16.msra.mxu1 %v3043_v12  ;;  %2483 = vmatprep.mubr.msk.f32.mxu1 %vm59_vm0, %v46_v15 }
  0x1f   :  { %2713 = vmatprep.subr.bf16.mxu1 %v2959_v14  ;;  %2724 = vmatpush3.bf16.msra.mxu0 %v3043_v12 }
  0x20   :  { %2725 = vmatprep.subr.bf16.mxu0 %v2959_v14  ;;  %2477 = vmatprep.mubr.msk.f32.mxu0 %vm59_vm0, %v42_v0 }
  0x21   :  { %2484 = vmatmul.mubr.msk.f32.gmra.mrb[2].mxu1 %vm59_vm0, %v47_v18  ;;  %2478 = vmatmul.mubr.msk.f32.gmra.mrb[2].mxu0 %vm59_vm0, %v43_v1 }
  0x22   :  { %2715 = vmatpush3.bf16.msra.mxu1 %v3060_v19  ;;  %2494 = vmatprep.mubr.msk.f32.mxu1 %vm2960_vm1, %v2961_v20 }
  0x23   :  { %2716 = vmatprep.subr.bf16.mxu1 %v2959_v14  ;;  %2727 = vmatpush3.bf16.msra.mxu0 %v3060_v19 }
  0x24   :  { %2734 = vmatprep.subr.bf16.mxu0 %v2959_v14  ;;  %2516 = vmatprep.mubr.msk.f32.mxu0 %vm2960_vm1, %v2961_v20 }
  0x25   :  { %2495 = vmatmul.mubr.f32.vlgmr.msra.gmra.mrb[4].mxu1 %v2961_v20 }
  0x26   :  { %2718 = vmatpush3.bf16.msra.mxu1 %v3043_v12  ;;  %2505 = vmatprep.mubr.msk.f32.mxu1 %vm2960_vm1, %v2961_v20 }
  0x27   :  { %2719 = vmatprep.subr.bf16.mxu1 %v2959_v14 }
  0x2a   :  { %2721 = vmatpush3.bf16.msra.mxu1 %v3060_v19 }
  0x2b   :  { %2728 = vmatprep.subr.bf16.mxu1 %v2959_v14 }
  0x8a   :  { %v3087_v27 = vpop.permute.xlu0 %288 }
  0xf0   :  { %v3079_v21 = vpop.f32.mrb[0].mxu1  ;;  %v2476_v22 = vpop.f32.mrb[0].mxu0 }
  0xf1   :  { %v3081_v23 = vpop.f32.mrb[1].mxu1  ;;  %v150_v24 = vpop.f32.mrb[1].mxu0  ;;  %v156_v52 = vadd.f32 %v2476_v22, %v3094_v31 }
  0xf2   :  { %v151_v32 = vadd.f32 %v3094_v31, %v150_v24 }
  0xf4   :  { %v3083_v25 = vpop.f32.mrb[2].mxu1  ;;  %v2479_v6 = vpop.f32.mrb[2].mxu0 }
  0xf5   :  { %v3085_v26 = vpop.f32.mrb[3].mxu1  ;;  %v160_v7 = vpop.f32.mrb[3].mxu0 }
  0xf6   :  { %v161_v13 = vadd.f32 %v3094_v31, %v160_v7 }
  0xf8   :  { %v277_v28 = vpop.f32.mrb[4].mxu1 }
  0xf9   :  { %v291_v29 = vadd.f32 %v3087_v27, %v277_v28  ;;  %v2496_v30 = vpop.f32.mrb[5].mxu1  ;;  %v281_v33 = vadd.f32 %v277_v28, %v151_v32 }
  0xfb   :  { %293 = vrot.lane.b32.xlu0 %v291_v29, %s2958_s28  ;;  %v2295_v34 = vmul.f32 -1.442695, %v281_v33 }
  0xfd   :  { %2835 = vpow2.f32 %v2295_v34 }
 0x107   :  { %v2836_v35 = vpop.eup %2835 }
 0x108   :  { %v285_v36 = vadd.f32 1.0, %v2836_v35 }
 0x10a   :  { %2837 = vrcp.f32 %v285_v36 }
 0x114   :  { %v2838_v37 = vpop.eup %2837 }
 0x16d   :  { %v294_v38 = vpop.permute.xlu0 %293 }
 0x16e   :  { %v296_v39 = vmul.f32 %v2838_v37, %v294_v38 }
 0x170   :  { %298 = vrot.lane.b32.xlu1 %v296_v39, %s2958_s28 }
 0x1e2   :  { %v299_v40 = vpop.permute.xlu1 %298 }
 0x1e3   :  { %v301_v41 = vadd.f32 %v299_v40, %v151_v32 }
 0x1e5   :  { %2839 = vtanh.f32 %v301_v41 }
 0x1ef   :  { %v2840_v42 = vpop.eup %2839 }
 0x1f0   :  { %v303_v43 = vsub.f32 0.0, %v2840_v42 }
 0x1f2   :  { %305 = vrot.lane.b32.xlu1 %v303_v43, %s2962_s16 }
 0x264   :  { %v306_v44 = vpop.permute.xlu1 %305 }
 0x265   :  { %v308_v45 = vmul.f32 %v2838_v37, %v306_v44 }
 0x267   :  { %310 = vrot.lane.b32.xlu0 %v308_v45, %s2963_s17 }
 0x2d9   :  { %v311_v46 = vpop.permute.xlu0 %310 }
 0x2da   :  { %v313_v47 = vadd.f32 %v2840_v42, %v311_v46  ;;  %v166_v42 = vadd.f32 %v2479_v6, %v3094_v31 }
 0x2dc   :  { %315 = vrot.lane.b32.xlu1 %v313_v47, %s2958_s28 }
 0x34e   :  { %v316_v48 = vpop.permute.xlu1 %315 }
 0x34f   :  { %318 = vst.msk [vmem:[#allocation2] sm:$0xff] %vm59_vm0, %v316_v48  ;;  %2506 = vmatmul.mubr.msk.f32.vlgmr.msra.gmra.mrb[6].mxu1 %vm59_vm0, %v316_v48 }
 0x350   :  { %2730 = vmatpush3.bf16.msra.mxu1 %v3043_v12  ;;  %2527 = vmatprep.mubr.msk.f32.mxu1 %vm2960_vm1, %v2961_v20 }
 0x351   :  { %2731 = vmatprep.subr.bf16.mxu1 %v2959_v14 }
 0x354   :  { %2733 = vmatpush3.bf16.msra.mxu1 %v3060_v19 }
 0x355   :  { %2740 = vmatprep.subr.bf16.mxu1 %v2959_v14 }
 0x422   :  { %v389_v49 = vpop.f32.mrb[6].mxu1 }
 0x423   :  { %v400_v50 = vadd.f32 %v389_v49, %v3087_v27  ;;  %v2507_v51 = vpop.f32.mrb[7].mxu1  ;;  %v393_v53 = vadd.f32 %v389_v49, %v156_v52 }
 0x425   :  { %402 = vrot.lane.b32.xlu0 %v400_v50, %s2958_s28  ;;  %v2297_v54 = vmul.f32 -1.442695, %v393_v53 }
 0x427   :  { %2841 = vpow2.f32 %v2297_v54 }
 0x431   :  { %v2842_v55 = vpop.eup %2841 }
 0x432   :  { %v397_v56 = vadd.f32 1.0, %v2842_v55 }
 0x434   :  { %2843 = vrcp.f32 %v397_v56 }
 0x43e   :  { %v2844_v57 = vpop.eup %2843 }
 0x497   :  { %v403_v58 = vpop.permute.xlu0 %402 }
 0x498   :  { %v405_v59 = vmul.f32 %v2844_v57, %v403_v58 }
 0x49a   :  { %407 = vrot.lane.b32.xlu1 %v405_v59, %s2958_s28 }
 0x50c   :  { %v408_v60 = vpop.permute.xlu1 %407 }
 0x50d   :  { %v410_v61 = vadd.f32 %v408_v60, %v156_v52 }
 0x50f   :  { %2845 = vtanh.f32 %v410_v61 }
 0x519   :  { %v2846_v62 = vpop.eup %2845 }
 0x51a   :  { %v412_v63 = vsub.f32 %v313_v47, %v2846_v62 }
 0x51c   :  { %414 = vrot.lane.b32.xlu0 %v412_v63, %s2962_s16 }
 0x58e   :  { %v415_v2 = vpop.permute.xlu0 %414 }
 0x58f   :  { %v417_v3 = vmul.f32 %v2844_v57, %v415_v2 }
 0x591   :  { %419 = vrot.lane.b32.xlu1 %v417_v3, %s2963_s17 }
 0x603   :  { %v420_v4 = vpop.permute.xlu1 %419 }
 0x604   :  { %v422_v5 = vadd.f32 %v2846_v62, %v420_v4  ;;  %v171_v62 = vadd.f32 %v3094_v31, %v3081_v23 }
 0x606   :  { %424 = vrot.lane.b32.xlu0 %v422_v5, %s2958_s28 }
 0x678   :  { %v425_v8 = vpop.permute.xlu0 %424 }
 0x679   :  { %428 = vst.msk [vmem:[#allocation2 + $0x8] sm:$0xff] %vm59_vm0, %v425_v8  ;;  %2517 = vmatmul.mubr.msk.f32.vlgmr.msra.gmra.mrb[4].mxu0 %vm59_vm0, %v425_v8 }
 0x67a   :  { %2736 = vmatpush3.bf16.msra.mxu0 %v3043_v12  ;;  %2538 = vmatprep.mubr.msk.f32.mxu0 %vm2960_vm1, %v2961_v20 }
 0x67b   :  { %2737 = vmatprep.subr.bf16.mxu0 %v2959_v14 }
 0x67e   :  { %2739 = vmatpush3.bf16.msra.mxu0 %v3060_v19 }
 0x67f   :  { %2746 = vmatprep.subr.bf16.mxu0 %v2959_v14 }
 0x74c   :  { %v499_v9 = vpop.f32.mrb[4].mxu0 }
 0x74d   :  { %v510_v10 = vadd.f32 %v499_v9, %v3087_v27  ;;  %v2518_v11 = vpop.f32.mrb[5].mxu0  ;;  %v503_v15 = vadd.f32 %v499_v9, %v161_v13 }
 0x74f   :  { %512 = vrot.lane.b32.xlu1 %v510_v10, %s2958_s28  ;;  %v2299_v16 = vmul.f32 -1.442695, %v503_v15 }
 0x751   :  { %2847 = vpow2.f32 %v2299_v16 }
 0x75b   :  { %v2848_v17 = vpop.eup %2847 }
 0x75c   :  { %v507_v18 = vadd.f32 1.0, %v2848_v17 }
 0x75e   :  { %2849 = vrcp.f32 %v507_v18 }
 0x768   :  { %v2850_v22 = vpop.eup %2849 }
 0x7c1   :  { %v513_v24 = vpop.permute.xlu1 %512 }
 0x7c2   :  { %v515_v28 = vmul.f32 %v2850_v22, %v513_v24 }
 0x7c4   :  { %517 = vrot.lane.b32.xlu0 %v515_v28, %s2958_s28 }
 0x836   :  { %v518_v29 = vpop.permute.xlu0 %517 }
 0x837   :  { %v520_v30 = vadd.f32 %v518_v29, %v161_v13 }
 0x839   :  { %2851 = vtanh.f32 %v520_v30 }
 0x843   :  { %v2852_v32 = vpop.eup %2851 }
 0x844   :  { %v522_v33 = vsub.f32 %v422_v5, %v2852_v32 }
 0x846   :  { %524 = vrot.lane.b32.xlu1 %v522_v33, %s2962_s16 }
 0x8b8   :  { %v525_v34 = vpop.permute.xlu1 %524 }
 0x8b9   :  { %v527_v35 = vmul.f32 %v2850_v22, %v525_v34  ;;  %v176_v22 = vadd.f32 %v3079_v21, %v3094_v31  ;;  %v2310_v21 = vld [vmem:[%s3448_s1 + $0x20] sm:$0xff] }
 0x8bb   :  { %529 = vrot.lane.b32.xlu0 %v527_v35, %s2963_s17 }
 0x92d   :  { %v530_v36 = vpop.permute.xlu0 %529 }
 0x92e   :  { %v532_v37 = vadd.f32 %v2852_v32, %v530_v36 }
 0x930   :  { %534 = vrot.lane.b32.xlu1 %v532_v37, %s2958_s28 }
 0x9a2   :  { %v535_v38 = vpop.permute.xlu1 %534 }
 0x9a3   :  { %538 = vst.msk [vmem:[#allocation2 + $0x10] sm:$0xff] %vm59_vm0, %v535_v38  ;;  %2528 = vmatmul.mubr.msk.f32.vlgmr.msra.gmra.mrb[8].mxu1 %vm59_vm0, %v535_v38 }
 0x9a4   :  { %2742 = vmatpush3.bf16.msra.mxu1 %v3043_v12  ;;  %2549 = vmatprep.mubr.msk.f32.mxu1 %vm2960_vm1, %v2961_v20 }
 0x9a5   :  { %2743 = vmatprep.subr.bf16.mxu1 %v2959_v14 }
 0x9a8   :  { %2745 = vmatpush3.bf16.msra.mxu1 %v3060_v19 }
 0x9a9   :  { %2752 = vmatprep.subr.bf16.mxu1 %v2959_v14 }
 0xa76   :  { %v609_v39 = vpop.f32.mrb[8].mxu1 }
 0xa77   :  { %v620_v40 = vadd.f32 %v609_v39, %v3087_v27  ;;  %v2529_v41 = vpop.f32.mrb[9].mxu1  ;;  %v613_v43 = vadd.f32 %v609_v39, %v166_v42 }
 0xa79   :  { %622 = vrot.lane.b32.xlu0 %v620_v40, %s2958_s28  ;;  %v2301_v44 = vmul.f32 -1.442695, %v613_v43  ;;  %v2312_v43 = vld [vmem:[%s3448_s1 + $0x30] sm:$0xff] }
 0xa7b   :  { %2853 = vpow2.f32 %v2301_v44  ;;  %v2313_v44 = vld [vmem:[%s3448_s1 + $0x38] sm:$0xff] }
 0xa85   :  { %v2854_v45 = vpop.eup %2853 }
 0xa86   :  { %v617_v46 = vadd.f32 1.0, %v2854_v45  ;;  %v2762_v45 = vpack.c.bf16 %v2313_v44, %v2312_v43 }
 0xa88   :  { %2855 = vrcp.f32 %v617_v46 }
 0xa92   :  { %v2856_v47 = vpop.eup %2855 }
 0xaeb   :  { %v623_v48 = vpop.permute.xlu0 %622 }
 0xaec   :  { %v625_v49 = vmul.f32 %v2856_v47, %v623_v48  ;;  %v1090_v48 = vld [vmem:[#allocation2 + $0x8] sm:$0xff] }
 0xaee   :  { %627 = vrot.lane.b32.xlu1 %v625_v49, %s2958_s28  ;;  %v1091_v49 = vld [vmem:[#allocation2 + $0x10] sm:$0xff] }
 0xb60   :  { %v628_v50 = vpop.permute.xlu1 %627 }
 0xb61   :  { %v630_v51 = vadd.f32 %v628_v50, %v166_v42 }
 0xb63   :  { %2857 = vtanh.f32 %v630_v51 }
 0xb6d   :  { %v2858_v52 = vpop.eup %2857 }
 0xb6e   :  { %v632_v53 = vsub.f32 %v532_v37, %v2858_v52  ;;  %v2311_v37 = vld [vmem:[%s3448_s1 + $0x28] sm:$0xff] }
 0xb6f   :  { %v2758_v38 = vpack.c.bf16 %v2311_v37, %v2310_v21 }
 0xb70   :  { %634 = vrot.lane.b32.xlu0 %v632_v53, %s2962_s16 }
 0xbe2   :  { %v635_v54 = vpop.permute.xlu0 %634 }
 0xbe3   :  { %v637_v55 = vmul.f32 %v2856_v47, %v635_v54  ;;  %v1089_v47 = vld [vmem:[#allocation2] sm:$0xff] }
 0xbe5   :  { %639 = vrot.lane.b32.xlu1 %v637_v55, %s2963_s17 }
 0xc57   :  { %v640_v56 = vpop.permute.xlu1 %639 }
 0xc58   :  { %v642_v57 = vadd.f32 %v2858_v52, %v640_v56 }
 0xc5a   :  { %644 = vrot.lane.b32.xlu0 %v642_v57, %s2958_s28 }
 0xccc   :  { %v645_v58 = vpop.permute.xlu0 %644 }
 0xccd   :  { %648 = vst.msk [vmem:[#allocation2 + $0x18] sm:$0xff] %vm59_vm0, %v645_v58  ;;  %2539 = vmatmul.mubr.msk.f32.vlgmr.msra.gmra.mrb[6].mxu0 %vm59_vm0, %v645_v58 }
 0xcce   :  { %2748 = vmatpush3.bf16.msra.mxu0 %v3043_v12  ;;  %2560 = vmatprep.mubr.msk.f32.mxu0 %vm2960_vm1, %v2961_v20 }
 0xccf   :  { %2749 = vmatprep.subr.bf16.mxu0 %v2959_v14 }
 0xcd2   :  { %2751 = vmatpush3.bf16.msra.mxu0 %v3060_v19 }
 0xcd3   :  { %2759 = vmatprep.subr.bf16.mxu0 %v2758_v38 }
 0xcd4   :  { %v1092_v50 = vld [vmem:[#allocation2 + $0x18] sm:$0xff] }
 0xda0   :  { %v719_v59 = vpop.f32.mrb[6].mxu0 }
 0xda1   :  { %v730_v60 = vadd.f32 %v719_v59, %v3087_v27  ;;  %v2540_v61 = vpop.f32.mrb[7].mxu0  ;;  %v723_v63 = vadd.f32 %v719_v59, %v171_v62 }
 0xda3   :  { %732 = vrot.lane.b32.xlu1 %v730_v60, %s2958_s28  ;;  %v2303_v0 = vmul.f32 -1.442695, %v723_v63 }
 0xda5   :  { %2859 = vpow2.f32 %v2303_v0 }
 0xdaf   :  { %v2860_v1 = vpop.eup %2859 }
 0xdb0   :  { %v727_v2 = vadd.f32 1.0, %v2860_v1 }
 0xdb2   :  { %2861 = vrcp.f32 %v727_v2 }
 0xdbc   :  { %v2862_v3 = vpop.eup %2861 }
 0xe15   :  { %v733_v4 = vpop.permute.xlu1 %732 }
 0xe16   :  { %v735_v5 = vmul.f32 %v2862_v3, %v733_v4 }
 0xe18   :  { %737 = vrot.lane.b32.xlu0 %v735_v5, %s2958_s28 }
 0xe8a   :  { %v738_v6 = vpop.permute.xlu0 %737 }
 0xe8b   :  { %v740_v7 = vadd.f32 %v738_v6, %v171_v62  ;;  %v181_v62 = vadd.f32 %v3094_v31, %v3085_v26 }
 0xe8d   :  { %2863 = vtanh.f32 %v740_v7 }
 0xe97   :  { %v2864_v8 = vpop.eup %2863 }
 0xe98   :  { %v742_v9 = vsub.f32 %v642_v57, %v2864_v8 }
 0xe9a   :  { %744 = vrot.lane.b32.xlu1 %v742_v9, %s2962_s16 }
 0xf0c   :  { %v745_v10 = vpop.permute.xlu1 %744 }
 0xf0d   :  { %v747_v23 = vmul.f32 %v2862_v3, %v745_v10 }
 0xf0f   :  { %749 = vrot.lane.b32.xlu0 %v747_v23, %s2963_s17  ;;  %v1255_v23 = vld [vmem:[#allocation4 + $0x20] sm:$0xff] }
 0xf81   :  { %v750_v11 = vpop.permute.xlu0 %749 }
 0xf82   :  { %v752_v13 = vadd.f32 %v2864_v8, %v750_v11  ;;  %v1256_v11 = vld [vmem:[#allocation4 + $0x28] sm:$0xff] }
 0xf84   :  { %754 = vrot.lane.b32.xlu1 %v752_v13, %s2958_s28 }
 0xff6   :  { %v755_v15 = vpop.permute.xlu1 %754 }
 0xff7   :  { %758 = vst.msk [vmem:[#allocation2 + $0x20] sm:$0xff] %vm59_vm0, %v755_v15  ;;  %2550 = vmatmul.mubr.msk.f32.vlgmr.msra.gmra.mrb[10].mxu1 %vm59_vm0, %v755_v15  ;;  %v1257_v15 = vld [vmem:[#allocation4 + $0x30] sm:$0xff] }
 0xff8   :  { %2754 = vmatpush3.bf16.msra.mxu1 %v3043_v12  ;;  %2571 = vmatprep.mubr.msk.f32.mxu1 %vm2960_vm1, %v2961_v20 }
 0xff9   :  { %2755 = vmatprep.subr.bf16.mxu1 %v2959_v14 }
 0xffc   :  { %2757 = vmatpush3.bf16.msra.mxu1 %v3060_v19 }
 0xffd   :  { %2766 = vmatprep.subr.bf16.mxu1 %v2959_v14 }
 0xffe   :  { %v1093_v51 = vld [vmem:[#allocation2 + $0x20] sm:$0xff] }
0x10ca   :  { %v829_v16 = vpop.f32.mrb[10].mxu1 }
0x10cb   :  { %v840_v17 = vadd.f32 %v829_v16, %v3087_v27  ;;  %v2551_v18 = vpop.f32.mrb[11].mxu1  ;;  %v833_v24 = vadd.f32 %v829_v16, %v176_v22  ;;  %v1258_v16 = vld [vmem:[#allocation4 + $0x38] sm:$0xff] }
0x10cc   :  { %v2325_v18 = vld [vmem:[%s3451_s4 + $0x1] ss:$0 sm:$0xff] }
0x10cd   :  { %842 = vrot.lane.b32.xlu0 %v840_v17, %s2958_s28  ;;  %v2305_v12 = vmul.f32 -1.442695, %v833_v24  ;;  %v3231_v17 = vpack.c.bf16 %v1258_v16, %v1257_v15 }
0x10cf   :  { %2865 = vpow2.f32 %v2305_v12 }
0x10d9   :  { %v2866_v28 = vpop.eup %2865 }
0x10da   :  { %v837_v29 = vadd.f32 1.0, %v2866_v28 }
0x10dc   :  { %2867 = vrcp.f32 %v837_v29 }
0x10e6   :  { %v2868_v30 = vpop.eup %2867 }
0x113f   :  { %v843_v32 = vpop.permute.xlu0 %842 }
0x1140   :  { %v845_v19 = vmul.f32 %v2868_v30, %v843_v32 }
0x1142   :  { %847 = vrot.lane.b32.xlu1 %v845_v19, %s2958_s28 }
0x11b4   :  { %v848_v33 = vpop.permute.xlu1 %847 }
0x11b5   :  { %v850_v34 = vadd.f32 %v848_v33, %v176_v22 }
0x11b7   :  { %2869 = vtanh.f32 %v850_v34 }
0x11c1   :  { %v2870_v35 = vpop.eup %2869 }
0x11c2   :  { %v852_v36 = vsub.f32 %v752_v13, %v2870_v35  ;;  %v3227_v13 = vpack.c.bf16 %v1256_v11, %v1255_v23 }
0x11c4   :  { %854 = vrot.lane.b32.xlu0 %v852_v36, %s2962_s16 }
0x1236   :  { %v855_v39 = vpop.permute.xlu0 %854 }
0x1237   :  { %v857_v40 = vmul.f32 %v2868_v30, %v855_v39 }
0x1239   :  { %859 = vrot.lane.b32.xlu1 %v857_v40, %s2963_s17 }
0x12ab   :  { %v860_v41 = vpop.permute.xlu1 %859 }
0x12ac   :  { %v862_v42 = vadd.f32 %v2870_v35, %v860_v41  ;;  %v3266_v35 = vld [vmem:[%s3450_s3 + $0x1] ss:$0 sm:$0xff] }
0x12ae   :  { %864 = vrot.lane.b32.xlu0 %v862_v42, %s2958_s28 }
0x1320   :  { %v865_v46 = vpop.permute.xlu0 %864 }
0x1321   :  { %868 = vst.msk [vmem:[#allocation2 + $0x28] sm:$0xff] %vm59_vm0, %v865_v46  ;;  %2561 = vmatmul.mubr.msk.f32.vlgmr.msra.gmra.mrb[8].mxu0 %vm59_vm0, %v865_v46 }
0x1322   :  { %2761 = vmatpush3.bf16.msra.mxu0 %v2758_v38  ;;  %2582 = vmatprep.mubr.msk.f32.mxu0 %vm59_vm0, %v1089_v47 }
0x1323   :  { %2763 = vmatprep.subr.bf16.mxu0 %v2762_v45 }
0x1326   :  { %2765 = vmatpush3.bf16.msra.mxu0 %v2762_v45 }
0x1327   :  { %2778 = vmatprep.subr.bf16.mxu0 %v2959_v14 }
0x1328   :  { %v1094_v52 = vld [vmem:[#allocation2 + $0x28] sm:$0xff] }
0x1329   :  { %2583 = vmatmul.mubr.msk.f32.vlgmr.msra.gmra.mrb[10].mxu0 %vm59_vm0, %v1090_v48 }
0x132a   :  { %2585 = vmatprep.mubr.msk.f32.mxu0 %vm59_vm0, %v1091_v49  ;;  %2780 = vmatpush3.bf16.msra.mxu0 %v3227_v13 }
0x132b   :  { %2781 = vmatprep.subr.bf16.mxu0 %v2959_v14 }
0x132d   :  { %2586 = vmatmul.mubr.msk.f32.gmra.mrb[12].mxu0 %vm59_vm0, %v1092_v50  ;;  %v186_v50 = vadd.f32 %v3083_v25, %v3094_v31 }
0x132e   :  { %2588 = vmatprep.mubr.msk.f32.mxu0 %vm59_vm0, %v1093_v51  ;;  %2783 = vmatpush3.bf16.msra.mxu0 %v3231_v17 }
0x132f   :  { %2790 = vmatprep.subr.bf16.mxu0 %v2959_v14 }
0x1331   :  { %2589 = vmatmul.mubr.msk.f32.gmra.mrb[14].mxu0 %vm59_vm0, %v1094_v52 }
0x13f4   :  { %v939_v53 = vpop.f32.mrb[8].mxu0 }
0x13f5   :  { %v950_v54 = vadd.f32 %v939_v53, %v3087_v27  ;;  %v2562_v55 = vpop.f32.mrb[9].mxu0  ;;  %v943_v63 = vadd.f32 %v939_v53, %v181_v62 }
0x13f7   :  { %952 = vrot.lane.b32.xlu1 %v950_v54, %s2958_s28  ;;  %v2307_v0 = vmul.f32 -1.442695, %v943_v63 }
0x13f9   :  { %2871 = vpow2.f32 %v2307_v0 }
0x13fc   :  { %v3210_v56 = vpop.f32.mrb[10].mxu0 }
0x13fd   :  { %v3212_v57 = vpop.f32.mrb[11].mxu0 }
0x13fe   :  { %v1201_v36 = vadd.f32 %v3266_v35, %v3212_v57 }
0x1400   :  { %v3214_v58 = vpop.f32.mrb[12].mxu0 }
0x1401   :  { %v3216_v59 = vpop.f32.mrb[13].mxu0 }
0x1403   :  { %v2872_v1 = vpop.eup %2871 }
0x1404   :  { %v3218_v60 = vpop.f32.mrb[14].mxu0  ;;  %v947_v2 = vadd.f32 1.0, %v2872_v1 }
0x1405   :  { %v3220_v61 = vpop.f32.mrb[15].mxu0 }
0x1406   :  { %2873 = vrcp.f32 %v947_v2 }
0x1410   :  { %v2874_v3 = vpop.eup %2873 }
0x1469   :  { %v953_v4 = vpop.permute.xlu1 %952 }
0x146a   :  { %v955_v5 = vmul.f32 %v2874_v3, %v953_v4 }
0x146c   :  { %957 = vrot.lane.b32.xlu0 %v955_v5, %s2958_s28 }
0x14de   :  { %v958_v6 = vpop.permute.xlu0 %957 }
0x14df   :  { %v960_v7 = vadd.f32 %v958_v6, %v181_v62 }
0x14e1   :  { %2875 = vtanh.f32 %v960_v7 }
0x14eb   :  { %v2876_v8 = vpop.eup %2875 }
0x14ec   :  { %v962_v9 = vsub.f32 %v862_v42, %v2876_v8 }
0x14ee   :  { %964 = vrot.lane.b32.xlu1 %v962_v9, %s2962_s16 }
0x1560   :  { %v965_v10 = vpop.permute.xlu1 %964 }
0x1561   :  { %v967_v26 = vmul.f32 %v2874_v3, %v965_v10  ;;  %v1206_v10 = vadd.f32 %v3210_v56, %v3266_v35 }
0x1563   :  { %969 = vrot.lane.b32.xlu0 %v967_v26, %s2963_s17 }
0x1567   :  { %1337 = vrot.lane.b32.xlu0 %v2325_v18, %s2958_s28 }
0x15d5   :  { %v970_v22 = vpop.permute.xlu0 %969 }
0x15d6   :  { %v3239_v24 = vadd.f32 %v2876_v8, %v970_v22 }
0x15d8   :  { %974 = vrot.lane.b32.xlu1 %v3239_v24, %s2958_s28 }
0x15d9   :  { %v3259_v32 = vpop.permute.xlu0 %1337 }
0x164a   :  { %v975_v12 = vpop.permute.xlu1 %974 }
0x164b   :  { %978 = vst.msk [vmem:[#allocation2 + $0x30] sm:$0xff] %vm59_vm0, %v975_v12  ;;  %2572 = vmatmul.mubr.msk.f32.vlgmr.msra.gmra.mrb[12].mxu1 %vm59_vm0, %v975_v12 }
0x164c   :  { %2768 = vmatpush3.bf16.msra.mxu1 %v3227_v13  ;;  %2602 = vmatprep.mubr.msk.f32.mxu1 %vm2960_vm1, %v2961_v20 }
0x164d   :  { %2769 = vmatprep.subr.bf16.mxu1 %v2959_v14 }
0x1650   :  { %2771 = vmatpush3.bf16.msra.mxu1 %v3231_v17 }
0x1651   :  { %2772 = vmatprep.subr.bf16.mxu1 %v2959_v14 }
0x1652   :  { %v1095_v28 = vld [vmem:[#allocation2 + $0x30] sm:$0xff] }
0x1653   :  { %2603 = vmatmul.mubr.f32.vlgmr.msra.gmra.mrb[14].mxu1 %v2961_v20  ;;  %2591 = vmatprep.mubr.msk.f32.mxu0 %vm59_vm0, %v1095_v28 }
0x1654   :  { %2774 = vmatpush3.bf16.msra.mxu1 %v3227_v13  ;;  %2613 = vmatprep.mubr.msk.f32.mxu1 %vm2960_vm1, %v2961_v20 }
0x1655   :  { %2775 = vmatprep.subr.bf16.mxu1 %v2959_v14 }
0x1658   :  { %2777 = vmatpush3.bf16.msra.mxu1 %v3231_v17 }
0x1659   :  { %2784 = vmatprep.subr.bf16.mxu1 %v2959_v14 }
0x171e   :  { %v1049_v29 = vpop.f32.mrb[12].mxu1 }
0x171f   :  { %v2573_v30 = vpop.f32.mrb[13].mxu1  ;;  %v1060_v49 = vadd.f32 %v1049_v29, %v3087_v27  ;;  %v1053_v51 = vadd.f32 %v1049_v29, %v186_v50 }
0x1721   :  { %v2309_v52 = vmul.f32 -1.442695, %v1053_v51 }
0x1726   :  { %v1326_v19 = vpop.f32.mrb[14].mxu1 }
0x1727   :  { %v1340_v33 = vadd.f32 %v3259_v32, %v1326_v19  ;;  %v2604_v34 = vpop.f32.mrb[15].mxu1  ;;  %v1330_v21 = vadd.f32 %v1326_v19, %v1201_v36 }
0x1729   :  { %1342 = vrot.lane.b32.xlu1 %v1340_v33, %s2958_s28  ;;  %v2326_v37 = vmul.f32 -1.442695, %v1330_v21 }
0x172b   :  { %2877 = vpow2.f32 %v2326_v37 }
0x1735   :  { %v2878_v38 = vpop.eup %2877 }
0x1736   :  { %v1334_v39 = vadd.f32 1.0, %v2878_v38 }
0x1738   :  { %2879 = vrcp.f32 %v1334_v39 }
0x1742   :  { %v2880_v40 = vpop.eup %2879 }
0x179b   :  { %v1343_v41 = vpop.permute.xlu1 %1342 }
0x179c   :  { %v1345_v42 = vmul.f32 %v2880_v40, %v1343_v41 }
0x179e   :  { %1347 = vrot.lane.b32.xlu0 %v1345_v42, %s2958_s28  ;;  %v1211_v42 = vadd.f32 %v3266_v35, %v3216_v59 }
0x1810   :  { %v1348_v43 = vpop.permute.xlu0 %1347 }
0x1811   :  { %v1350_v44 = vadd.f32 %v1348_v43, %v1201_v36 }
0x1813   :  { %2881 = vtanh.f32 %v1350_v44 }
0x1814   :  { %2883 = vpow2.f32 %v2309_v52 }
0x181d   :  { %v2882_v45 = vpop.eup %2881 }
0x181e   :  { %v1352_v46 = vsub.f32 0.0, %v2882_v45  ;;  %v2884_v53 = vpop.eup %2883 }
0x181f   :  { %v1057_v54 = vadd.f32 1.0, %v2884_v53 }
0x1820   :  { %1354 = vrot.lane.b32.xlu1 %v1352_v46, %s2962_s16 }
0x1821   :  { %2885 = vrcp.f32 %v1057_v54 }
0x182b   :  { %v2886_v62 = vpop.eup %2885 }
0x1892   :  { %v1355_v47 = vpop.permute.xlu1 %1354 }
0x1893   :  { %v1357_v48 = vmul.f32 %v2880_v40, %v1355_v47 }
0x1895   :  { %1359 = vrot.lane.b32.xlu0 %v1357_v48, %s2963_s17 }
0x1899   :  { %1062 = vrot.lane.b32.xlu0 %v1060_v49, %s2958_s28 }
0x1907   :  { %v1360_v55 = vpop.permute.xlu0 %1359 }
0x1908   :  { %v1362_v57 = vadd.f32 %v2882_v45, %v1360_v55 }
0x190a   :  { %1364 = vrot.lane.b32.xlu1 %v1362_v57, %s2958_s28 }
0x190b   :  { %v1063_v63 = vpop.permute.xlu0 %1062 }
0x190c   :  { %v1065_v0 = vmul.f32 %v2886_v62, %v1063_v63 }
0x190e   :  { %1067 = vrot.lane.b32.xlu0 %v1065_v0, %s2958_s28 }
0x197c   :  { %v1365_v27 = vpop.permute.xlu1 %1364 }
0x197d   :  { %1367 = vst.msk [vmem:[#allocation2] sm:$0xff] %vm59_vm0, %v1365_v27  ;;  %2614 = vmatmul.mubr.msk.f32.vlgmr.msra.gmra.mrb[16].mxu1 %vm59_vm0, %v1365_v27 }
0x197e   :  { %2786 = vmatpush3.bf16.msra.mxu1 %v3227_v13  ;;  %2635 = vmatprep.mubr.msk.f32.mxu1 %vm2960_vm1, %v2961_v20 }
0x197f   :  { %2787 = vmatprep.subr.bf16.mxu1 %v2959_v14 }
0x1980   :  { %v1068_v25 = vpop.permute.xlu0 %1067 }
0x1981   :  { %v1070_v31 = vadd.f32 %v1068_v25, %v186_v50  ;;  %v1216_v25 = vadd.f32 %v3214_v58, %v3266_v35 }
0x1982   :  { %2789 = vmatpush3.bf16.msra.mxu1 %v3231_v17 }
0x1983   :  { %2887 = vtanh.f32 %v1070_v31  ;;  %2796 = vmatprep.subr.bf16.mxu1 %v2959_v14 }
0x198d   :  { %v2888_v1 = vpop.eup %2887 }
0x198e   :  { %v1072_v2 = vsub.f32 %v3239_v24, %v2888_v1 }
0x1990   :  { %1074 = vrot.lane.b32.xlu0 %v1072_v2, %s2962_s16 }
0x1a02   :  { %v1075_v3 = vpop.permute.xlu0 %1074 }
0x1a03   :  { %v1077_v4 = vmul.f32 %v2886_v62, %v1075_v3 }
0x1a05   :  { %1079 = vrot.lane.b32.xlu0 %v1077_v4, %s2963_s17 }
0x1a50   :  { %v1437_v5 = vpop.f32.mrb[16].mxu1 }
0x1a51   :  { %v1448_v6 = vadd.f32 %v1437_v5, %v3259_v32  ;;  %v2615_v7 = vpop.f32.mrb[17].mxu1  ;;  %v1441_v26 = vadd.f32 %v1437_v5, %v1206_v10 }
0x1a53   :  { %1450 = vrot.lane.b32.xlu1 %v1448_v6, %s2958_s28  ;;  %v2328_v23 = vmul.f32 -1.442695, %v1441_v26 }
0x1a55   :  { %2889 = vpow2.f32 %v2328_v23 }
0x1a5f   :  { %v2890_v11 = vpop.eup %2889 }
0x1a60   :  { %v1445_v15 = vadd.f32 1.0, %v2890_v11 }
0x1a62   :  { %2891 = vrcp.f32 %v1445_v15 }
0x1a6c   :  { %v2892_v16 = vpop.eup %2891 }
0x1a77   :  { %v1080_v8 = vpop.permute.xlu0 %1079 }
0x1a78   :  { %v1082_v9 = vadd.f32 %v2888_v1, %v1080_v8 }
0x1a7a   :  { %1084 = vrot.lane.b32.xlu0 %v1082_v9, %s2958_s28 }
0x1ac5   :  { %v1451_v18 = vpop.permute.xlu1 %1450 }
0x1ac6   :  { %v1453_v22 = vmul.f32 %v2892_v16, %v1451_v18 }
0x1ac8   :  { %1455 = vrot.lane.b32.xlu1 %v1453_v22, %s2958_s28 }
0x1aec   :  { %v1085_v24 = vpop.permute.xlu0 %1084 }
0x1aed   :  { %1088 = vst.msk [vmem:[#allocation2 + $0x38] sm:$0xff] %vm59_vm0, %v1085_v24  ;;  %v1221_v24 = vadd.f32 %v3266_v35, %v3220_v61 }
0x1af4   :  { %v1096_v12 = vld [vmem:[#allocation2 + $0x38] sm:$0xff] }
0x1af5   :  { %2592 = vmatmul.mubr.msk.f32.gmra.mrb[16].mxu0 %vm59_vm0, %v1096_v12 }
0x1af6   :  { %2624 = vmatprep.mubr.msk.f32.mxu0 %vm2960_vm1, %v2961_v20 }
0x1b3a   :  { %v1456_v56 = vpop.permute.xlu1 %1455 }
0x1b3b   :  { %v1458_v28 = vadd.f32 %v1456_v56, %v1206_v10 }
0x1b3d   :  { %2893 = vtanh.f32 %v1458_v28 }
0x1b47   :  { %v2894_v29 = vpop.eup %2893 }
0x1b48   :  { %v1460_v30 = vsub.f32 %v1362_v57, %v2894_v29 }
0x1b4a   :  { %1462 = vrot.lane.b32.xlu1 %v1460_v30, %s2962_s16 }
0x1bbc   :  { %v1463_v19 = vpop.permute.xlu1 %1462 }
0x1bbd   :  { %v1465_v33 = vmul.f32 %v2892_v16, %v1463_v19 }
0x1bbf   :  { %1467 = vrot.lane.b32.xlu1 %v1465_v33, %s2963_s17 }
0x1bc8   :  { %v3302_v34 = vpop.f32.mrb[16].mxu0 }
0x1bc9   :  { %v3304_v36 = vpop.f32.mrb[17].mxu0 }
0x1c31   :  { %v1468_v21 = vpop.permute.xlu1 %1467 }
0x1c32   :  { %v1470_v37 = vadd.f32 %v2894_v29, %v1468_v21 }
0x1c34   :  { %1472 = vrot.lane.b32.xlu1 %v1470_v37, %s2958_s28 }
0x1ca6   :  { %v1473_v38 = vpop.permute.xlu1 %1472 }
0x1ca7   :  { %1475 = vst.msk [vmem:[#allocation2 + $0x8] sm:$0xff] %vm59_vm0, %v1473_v38  ;;  %2625 = vmatmul.mubr.msk.f32.vlgmr.msra.gmra.mrb[18].mxu0 %vm59_vm0, %v1473_v38 }
0x1ca8   :  { %2792 = vmatpush3.bf16.msra.mxu0 %v3227_v13  ;;  %2646 = vmatprep.mubr.msk.f32.mxu0 %vm2960_vm1, %v2961_v20 }
0x1ca9   :  { %2793 = vmatprep.subr.bf16.mxu0 %v2959_v14 }
0x1cac   :  { %2795 = vmatpush3.bf16.msra.mxu0 %v3231_v17 }
0x1cad   :  { %2802 = vmatprep.subr.bf16.mxu0 %v2959_v14 }
0x1d7a   :  { %v1545_v39 = vpop.f32.mrb[18].mxu0 }
0x1d7b   :  { %v1556_v40 = vadd.f32 %v1545_v39, %v3259_v32  ;;  %v2626_v41 = vpop.f32.mrb[19].mxu0  ;;  %v1549_v43 = vadd.f32 %v1545_v39, %v1211_v42 }
0x1d7d   :  { %1558 = vrot.lane.b32.xlu0 %v1556_v40, %s2958_s28  ;;  %v2330_v44 = vmul.f32 -1.442695, %v1549_v43 }
0x1d7f   :  { %2895 = vpow2.f32 %v2330_v44 }
0x1d89   :  { %v2896_v45 = vpop.eup %2895 }
0x1d8a   :  { %v1553_v46 = vadd.f32 1.0, %v2896_v45 }
0x1d8c   :  { %2897 = vrcp.f32 %v1553_v46 }
0x1d96   :  { %v2898_v47 = vpop.eup %2897 }
0x1def   :  { %v1559_v48 = vpop.permute.xlu0 %1558 }
0x1df0   :  { %v1561_v49 = vmul.f32 %v2898_v47, %v1559_v48 }
0x1df2   :  { %1563 = vrot.lane.b32.xlu1 %v1561_v49, %s2958_s28 }
0x1e64   :  { %v1564_v50 = vpop.permute.xlu1 %1563 }
0x1e65   :  { %v1566_v51 = vadd.f32 %v1564_v50, %v1211_v42 }
0x1e67   :  { %2899 = vtanh.f32 %v1566_v51 }
0x1e71   :  { %v2900_v52 = vpop.eup %2899 }
0x1e72   :  { %v1568_v53 = vsub.f32 %v1470_v37, %v2900_v52 }
0x1e74   :  { %1570 = vrot.lane.b32.xlu0 %v1568_v53, %s2962_s16 }
0x1ee6   :  { %v1571_v54 = vpop.permute.xlu0 %1570 }
0x1ee7   :  { %v1573_v59 = vmul.f32 %v2898_v47, %v1571_v54  ;;  %v1226_v47 = vadd.f32 %v3218_v60, %v3266_v35  ;;  %v2132_v60 = vld [vmem:[%s3452_s5] sm:$0xff] }
0x1ee9   :  { %1575 = vrot.lane.b32.xlu1 %v1573_v59, %s2963_s17  ;;  %v2133_v59 = vld [vmem:[%s3452_s5 + $0x8] sm:$0xff] }
0x1f5b   :  { %v1576_v55 = vpop.permute.xlu1 %1575 }
0x1f5c   :  { %v1578_v57 = vadd.f32 %v2900_v52, %v1576_v55  ;;  %v2814_v55 = vpack.c.bf16 %v2133_v59, %v2132_v60 }
0x1f5e   :  { %1580 = vrot.lane.b32.xlu0 %v1578_v57, %s2958_s28 }
0x1fd0   :  { %v1581_v62 = vpop.permute.xlu0 %1580 }
0x1fd1   :  { %1583 = vst.msk [vmem:[#allocation2 + $0x10] sm:$0xff] %vm59_vm0, %v1581_v62  ;;  %2636 = vmatmul.mubr.msk.f32.vlgmr.msra.gmra.mrb[18].mxu1 %vm59_vm0, %v1581_v62 }
0x1fd2   :  { %2798 = vmatpush3.bf16.msra.mxu1 %v3227_v13  ;;  %2657 = vmatprep.mubr.msk.f32.mxu1 %vm2960_vm1, %v2961_v20 }
0x1fd3   :  { %2799 = vmatprep.subr.bf16.mxu1 %v2959_v14 }
0x1fd6   :  { %2801 = vmatpush3.bf16.msra.mxu1 %v3231_v17 }
0x1fd7   :  { %2808 = vmatprep.subr.bf16.mxu1 %v2959_v14 }
0x20a4   :  { %v1653_v63 = vpop.f32.mrb[18].mxu1 }
0x20a5   :  { %v1664_v0 = vadd.f32 %v1653_v63, %v3259_v32  ;;  %v2637_v27 = vpop.f32.mrb[19].mxu1  ;;  %v1657_v31 = vadd.f32 %v1653_v63, %v1216_v25 }
0x20a6   :  { %v2134_v27 = vld [vmem:[%s3452_s5 + $0x10] sm:$0xff] }
0x20a7   :  { %1666 = vrot.lane.b32.xlu1 %v1664_v0, %s2958_s28  ;;  %v2332_v1 = vmul.f32 -1.442695, %v1657_v31 }
0x20a9   :  { %2901 = vpow2.f32 %v2332_v1 }
0x20b3   :  { %v2902_v2 = vpop.eup %2901 }
0x20b4   :  { %v1661_v3 = vadd.f32 1.0, %v2902_v2  ;;  %v2124_v2 = vld [vmem:[#allocation2] sm:$0xff] }
0x20b6   :  { %2903 = vrcp.f32 %v1661_v3  ;;  %v2125_v3 = vld [vmem:[#allocation2 + $0x8] sm:$0xff] }
0x20c0   :  { %v2904_v4 = vpop.eup %2903 }
0x2119   :  { %v1667_v5 = vpop.permute.xlu1 %1666 }
0x211a   :  { %v1669_v6 = vmul.f32 %v2904_v4, %v1667_v5 }
0x211c   :  { %1671 = vrot.lane.b32.xlu0 %v1669_v6, %s2958_s28 }
0x218e   :  { %v1672_v7 = vpop.permute.xlu0 %1671 }
0x218f   :  { %v1674_v8 = vadd.f32 %v1672_v7, %v1216_v25  ;;  %v2135_v25 = vld [vmem:[%s3452_s5 + $0x18] sm:$0xff] }
0x2190   :  { %v2818_v31 = vpack.c.bf16 %v2135_v25, %v2134_v27 }
0x2191   :  { %2905 = vtanh.f32 %v1674_v8 }
0x219b   :  { %v2906_v9 = vpop.eup %2905 }
0x219c   :  { %v1676_v10 = vsub.f32 %v1578_v57, %v2906_v9 }
0x219e   :  { %1678 = vrot.lane.b32.xlu1 %v1676_v10, %s2962_s16 }
0x2210   :  { %v1679_v26 = vpop.permute.xlu1 %1678 }
0x2211   :  { %v1681_v58 = vmul.f32 %v2904_v4, %v1679_v26  ;;  %v2126_v4 = vld [vmem:[#allocation2 + $0x10] sm:$0xff]  ;;  %v3394_v26 = vld [vmem:[%s3453_s6] ss:$0 sm:$0xff] }
0x2213   :  { %1683 = vrot.lane.b32.xlu0 %v1681_v58, %s2963_s17 }
0x2285   :  { %v1684_v23 = vpop.permute.xlu0 %1683 }
0x2286   :  { %v1686_v11 = vadd.f32 %v2906_v9, %v1684_v23 }
0x2288   :  { %1688 = vrot.lane.b32.xlu1 %v1686_v11, %s2958_s28 }
0x22fa   :  { %v1689_v15 = vpop.permute.xlu1 %1688 }
0x22fb   :  { %1691 = vst.msk [vmem:[#allocation2 + $0x18] sm:$0xff] %vm59_vm0, %v1689_v15  ;;  %2647 = vmatmul.mubr.msk.f32.vlgmr.msra.gmra.mrb[20].mxu0 %vm59_vm0, %v1689_v15 }
0x22fc   :  { %2804 = vmatpush3.bf16.msra.mxu0 %v3227_v13  ;;  %2668 = vmatprep.mubr.msk.f32.mxu0 %vm2960_vm1, %v2961_v20 }
0x22fd   :  { %2805 = vmatprep.subr.bf16.mxu0 %v2959_v14 }
0x2300   :  { %2807 = vmatpush3.bf16.msra.mxu0 %v3231_v17 }
0x2301   :  { %2815 = vmatprep.subr.bf16.mxu0 %v2814_v55 }
0x2302   :  { %v2127_v5 = vld [vmem:[#allocation2 + $0x18] sm:$0xff] }
0x23ce   :  { %v1761_v16 = vpop.f32.mrb[20].mxu0 }
0x23cf   :  { %v1772_v18 = vadd.f32 %v1761_v16, %v3259_v32  ;;  %v2648_v22 = vpop.f32.mrb[21].mxu0  ;;  %v1765_v12 = vadd.f32 %v1761_v16, %v1221_v24 }
0x23d1   :  { %1774 = vrot.lane.b32.xlu0 %v1772_v18, %s2958_s28  ;;  %v2334_v56 = vmul.f32 -1.442695, %v1765_v12 }
0x23d3   :  { %2907 = vpow2.f32 %v2334_v56 }
0x23dd   :  { %v2908_v28 = vpop.eup %2907 }
0x23de   :  { %v1769_v29 = vadd.f32 1.0, %v2908_v28 }
0x23e0   :  { %2909 = vrcp.f32 %v1769_v29 }
0x23ea   :  { %v2910_v30 = vpop.eup %2909 }
0x2443   :  { %v1775_v19 = vpop.permute.xlu0 %1774 }
0x2444   :  { %v1777_v33 = vmul.f32 %v2910_v30, %v1775_v19 }
0x2446   :  { %1779 = vrot.lane.b32.xlu1 %v1777_v33, %s2958_s28 }
0x24b8   :  { %v1780_v21 = vpop.permute.xlu1 %1779 }
0x24b9   :  { %v1782_v37 = vadd.f32 %v1780_v21, %v1221_v24 }
0x24bb   :  { %2911 = vtanh.f32 %v1782_v37 }
0x24c5   :  { %v2912_v38 = vpop.eup %2911 }
0x24c6   :  { %v1784_v39 = vsub.f32 %v1686_v11, %v2912_v38 }
0x24c8   :  { %1786 = vrot.lane.b32.xlu0 %v1784_v39, %s2962_s16 }
0x253a   :  { %v1787_v40 = vpop.permute.xlu0 %1786 }
0x253b   :  { %v1789_v61 = vmul.f32 %v2910_v30, %v1787_v40  ;;  %v1231_v30 = vadd.f32 %v3266_v35, %v3304_v36 }
0x253d   :  { %1791 = vrot.lane.b32.xlu1 %v1789_v61, %s2963_s17 }
0x25af   :  { %v1792_v41 = vpop.permute.xlu1 %1791 }
0x25b0   :  { %v1794_v42 = vadd.f32 %v2912_v38, %v1792_v41 }
0x25b2   :  { %1796 = vrot.lane.b32.xlu0 %v1794_v42, %s2958_s28 }
0x2624   :  { %v1797_v43 = vpop.permute.xlu0 %1796 }
0x2625   :  { %1799 = vst.msk [vmem:[#allocation2 + $0x20] sm:$0xff] %vm59_vm0, %v1797_v43  ;;  %2658 = vmatmul.mubr.msk.f32.vlgmr.msra.gmra.mrb[20].mxu1 %vm59_vm0, %v1797_v43 }
0x2626   :  { %2810 = vmatpush3.bf16.msra.mxu1 %v3227_v13  ;;  %2679 = vmatprep.mubr.msk.f32.mxu1 %vm2960_vm1, %v2961_v20 }
0x2627   :  { %2811 = vmatprep.subr.bf16.mxu1 %v2959_v14 }
0x262a   :  { %2813 = vmatpush3.bf16.msra.mxu1 %v3231_v17 }
0x262c   :  { %v2128_v6 = vld [vmem:[#allocation2 + $0x20] sm:$0xff] }
0x26f8   :  { %v1869_v44 = vpop.f32.mrb[20].mxu1 }
0x26f9   :  { %v1880_v45 = vadd.f32 %v1869_v44, %v3259_v32  ;;  %v2659_v46 = vpop.f32.mrb[21].mxu1  ;;  %v1873_v48 = vadd.f32 %v1869_v44, %v1226_v47 }
0x26fb   :  { %1882 = vrot.lane.b32.xlu1 %v1880_v45, %s2958_s28  ;;  %v2336_v49 = vmul.f32 -1.442695, %v1873_v48 }
0x26fd   :  { %2913 = vpow2.f32 %v2336_v49 }
0x2707   :  { %v2914_v13 = vpop.eup %2913 }
0x2708   :  { %v1877_v50 = vadd.f32 1.0, %v2914_v13 }
0x270a   :  { %2915 = vrcp.f32 %v1877_v50 }
0x2714   :  { %v2916_v20 = vpop.eup %2915 }
0x276d   :  { %v1883_v51 = vpop.permute.xlu1 %1882 }
0x276e   :  { %v1885_v14 = vmul.f32 %v2916_v20, %v1883_v51 }
0x2770   :  { %1887 = vrot.lane.b32.xlu0 %v1885_v14, %s2958_s28 }
0x27e2   :  { %v1888_v17 = vpop.permute.xlu0 %1887 }
0x27e3   :  { %v1890_v52 = vadd.f32 %v1888_v17, %v1226_v47 }
0x27e5   :  { %2917 = vtanh.f32 %v1890_v52 }
0x27ef   :  { %v2918_v53 = vpop.eup %2917 }
0x27f0   :  { %v1892_v54 = vsub.f32 %v1794_v42, %v2918_v53 }
0x27f2   :  { %1894 = vrot.lane.b32.xlu1 %v1892_v54, %s2962_s16 }
0x2864   :  { %v1895_v57 = vpop.permute.xlu1 %1894 }
0x2865   :  { %v1897_v62 = vmul.f32 %v2916_v20, %v1895_v57  ;;  %v1236_v20 = vadd.f32 %v3302_v34, %v3266_v35 }
0x2867   :  { %1899 = vrot.lane.b32.xlu0 %v1897_v62, %s2963_s17 }
0x28d9   :  { %v1900_v63 = vpop.permute.xlu0 %1899 }
0x28da   :  { %v1902_v0 = vadd.f32 %v2918_v53, %v1900_v63 }
0x28dc   :  { %1904 = vrot.lane.b32.xlu1 %v1902_v0, %s2958_s28 }
0x294e   :  { %v1905_v1 = vpop.permute.xlu1 %1904 }
0x294f   :  { %1907 = vst.msk [vmem:[#allocation2 + $0x28] sm:$0xff] %vm59_vm0, %v1905_v1  ;;  %2669 = vmatmul.mubr.msk.f32.vlgmr.msra.gmra.mrb[22].mxu0 %vm59_vm0, %v1905_v1 }
0x2950   :  { %2817 = vmatpush3.bf16.msra.mxu0 %v2814_v55  ;;  %2690 = vmatprep.mubr.msk.f32.mxu0 %vm59_vm0, %v2124_v2 }
0x2951   :  { %2819 = vmatprep.subr.bf16.mxu0 %v2818_v31 }
0x2954   :  { %2821 = vmatpush3.bf16.msra.mxu0 %v2818_v31 }
0x2956   :  { %v2129_v7 = vld [vmem:[#allocation2 + $0x28] sm:$0xff] }
0x2957   :  { %2691 = vmatmul.mubr.msk.f32.vlgmr.msra.gmra.mrb[24].mxu0 %vm59_vm0, %v2125_v3 }
0x2958   :  { %2693 = vmatprep.mubr.msk.f32.mxu0 %vm59_vm0, %v2126_v4 }
0x295b   :  { %2694 = vmatmul.mubr.msk.f32.gmra.mrb[26].mxu0 %vm59_vm0, %v2127_v5 }
0x295c   :  { %2696 = vmatprep.mubr.msk.f32.mxu0 %vm59_vm0, %v2128_v6 }
0x295f   :  { %2697 = vmatmul.mubr.msk.f32.gmra.mrb[28].mxu0 %vm59_vm0, %v2129_v7 }
0x2a22   :  { %v1977_v8 = vpop.f32.mrb[22].mxu0 }
0x2a23   :  { %v1988_v9 = vadd.f32 %v1977_v8, %v3259_v32  ;;  %v2670_v10 = vpop.f32.mrb[23].mxu0  ;;  %v1981_v19 = vadd.f32 %v1977_v8, %v1231_v30 }
0x2a25   :  { %1990 = vrot.lane.b32.xlu0 %v1988_v9, %s2958_s28  ;;  %v2338_v33 = vmul.f32 -1.442695, %v1981_v19 }
0x2a27   :  { %2919 = vpow2.f32 %v2338_v33 }
0x2a2a   :  { %v2692_v58 = vpop.f32.mrb[24].mxu0 }
0x2a2b   :  { %v2239_v23 = vadd.f32 %v2692_v58, %v3394_v26  ;;  %v2233_v11 = vpop.f32.mrb[25].mxu0 }
0x2a2c   :  { %v2234_v15 = vadd.f32 %v3394_v26, %v2233_v11 }
0x2a2d   :  { %2273 = vst [vmem:[%s3454_s7 + $0x8] sm:$0xff] %v2239_v23 }
0x2a2e   :  { %2272 = vst [vmem:[%s3454_s7] sm:$0xff] %v2234_v15  ;;  %v2695_v16 = vpop.f32.mrb[26].mxu0 }
0x2a2f   :  { %v2249_v18 = vadd.f32 %v2695_v16, %v3394_v26  ;;  %v2243_v22 = vpop.f32.mrb[27].mxu0 }
0x2a30   :  { %v2244_v24 = vadd.f32 %v3394_v26, %v2243_v22 }
0x2a31   :  { %2275 = vst [vmem:[%s3454_s7 + $0x18] sm:$0xff] %v2249_v18  ;;  %v2920_v21 = vpop.eup %2919 }
0x2a32   :  { %2274 = vst [vmem:[%s3454_s7 + $0x10] sm:$0xff] %v2244_v24  ;;  %v2698_v12 = vpop.f32.mrb[28].mxu0  ;;  %v1985_v37 = vadd.f32 1.0, %v2920_v21 }
0x2a33   :  { %v2259_v56 = vadd.f32 %v2698_v12, %v3394_v26  ;;  %v2253_v28 = vpop.f32.mrb[29].mxu0 }
0x2a34   :  { %v2254_v29 = vadd.f32 %v3394_v26, %v2253_v28  ;;  %2921 = vrcp.f32 %v1985_v37 }
0x2a35   :  { %2277 = vst [vmem:[%s3454_s7 + $0x28] sm:$0xff] %v2259_v56 }
0x2a36   :  { %2276 = vst [vmem:[%s3454_s7 + $0x20] sm:$0xff] %v2254_v29 }
0x2a3e   :  { %v2922_v38 = vpop.eup %2921 }
0x2a97   :  { %v1991_v39 = vpop.permute.xlu0 %1990 }
0x2a98   :  { %v1993_v40 = vmul.f32 %v2922_v38, %v1991_v39 }
0x2a9a   :  { %1995 = vrot.lane.b32.xlu1 %v1993_v40, %s2958_s28 }
0x2b0c   :  { %v1996_v61 = vpop.permute.xlu1 %1995 }
0x2b0d   :  { %v1998_v41 = vadd.f32 %v1996_v61, %v1231_v30 }
0x2b0f   :  { %2923 = vtanh.f32 %v1998_v41 }
0x2b19   :  { %v2924_v42 = vpop.eup %2923 }
0x2b1a   :  { %v2000_v43 = vsub.f32 %v1902_v0, %v2924_v42 }
0x2b1c   :  { %2002 = vrot.lane.b32.xlu0 %v2000_v43, %s2962_s16 }
0x2b8e   :  { %v2003_v44 = vpop.permute.xlu0 %2002 }
0x2b8f   :  { %v2005_v36 = vmul.f32 %v2922_v38, %v2003_v44 }
0x2b91   :  { %2007 = vrot.lane.b32.xlu1 %v2005_v36, %s2963_s17 }
0x2c03   :  { %v2008_v45 = vpop.permute.xlu1 %2007 }
0x2c04   :  { %v2010_v46 = vadd.f32 %v2924_v42, %v2008_v45 }
0x2c06   :  { %2012 = vrot.lane.b32.xlu0 %v2010_v46, %s2958_s28 }
0x2c78   :  { %v2013_v47 = vpop.permute.xlu0 %2012 }
0x2c79   :  { %2015 = vst.msk [vmem:[#allocation2 + $0x30] sm:$0xff] %vm59_vm0, %v2013_v47  ;;  %2680 = vmatmul.mubr.msk.f32.vlgmr.msra.gmra.mrb[22].mxu1 %vm59_vm0, %v2013_v47 }
0x2c80   :  { %v2130_v48 = vld [vmem:[#allocation2 + $0x30] sm:$0xff] }
0x2c81   :  { %2699 = vmatprep.mubr.msk.f32.mxu0 %vm59_vm0, %v2130_v48 }
0x2d4c   :  { %v2085_v49 = vpop.f32.mrb[22].mxu1 }
0x2d4d   :  { %v2096_v13 = vadd.f32 %v2085_v49, %v3259_v32  ;;  %v2681_v50 = vpop.f32.mrb[23].mxu1  ;;  %v2089_v51 = vadd.f32 %v2085_v49, %v1236_v20 }
0x2d4f   :  { %2098 = vrot.lane.b32.xlu1 %v2096_v13, %s2958_s28  ;;  %v2340_v14 = vmul.f32 -1.442695, %v2089_v51 }
0x2d51   :  { %2925 = vpow2.f32 %v2340_v14 }
0x2d5b   :  { %v2926_v17 = vpop.eup %2925 }
0x2d5c   :  { %v2093_v52 = vadd.f32 1.0, %v2926_v17 }
0x2d5e   :  { %2927 = vrcp.f32 %v2093_v52 }
0x2d68   :  { %v2928_v53 = vpop.eup %2927 }
0x2dc1   :  { %v2099_v54 = vpop.permute.xlu1 %2098 }
0x2dc2   :  { %v2101_v60 = vmul.f32 %v2928_v53, %v2099_v54 }
0x2dc4   :  { %2103 = vrot.lane.b32.xlu0 %v2101_v60, %s2958_s28 }
0x2e36   :  { %v2104_v59 = vpop.permute.xlu0 %2103 }
0x2e37   :  { %v2106_v55 = vadd.f32 %v2104_v59, %v1236_v20 }
0x2e39   :  { %2929 = vtanh.f32 %v2106_v55 }
0x2e43   :  { %v2930_v32 = vpop.eup %2929 }
0x2e44   :  { %v2108_v57 = vsub.f32 %v2010_v46, %v2930_v32 }
0x2e46   :  { %2110 = vrot.lane.b32.xlu1 %v2108_v57, %s2962_s16 }
0x2eb8   :  { %v2111_v62 = vpop.permute.xlu1 %2110 }
0x2eb9   :  { %v2113_v35 = vmul.f32 %v2928_v53, %v2111_v62 }
0x2ebb   :  { %2115 = vrot.lane.b32.xlu0 %v2113_v35, %s2963_s17 }
0x2f2d   :  { %v2116_v34 = vpop.permute.xlu0 %2115 }
0x2f2e   :  { %v2118_v63 = vadd.f32 %v2930_v32, %v2116_v34 }
0x2f30   :  { %2120 = vrot.lane.b32.xlu1 %v2118_v63, %s2958_s28 }
0x2fa2   :  { %v2121_v0 = vpop.permute.xlu1 %2120 }
0x2fa3   :  { %2123 = vst.msk [vmem:[#allocation2 + $0x38] sm:$0xff] %vm59_vm0, %v2121_v0 }
0x2faa   :  { %v2131_v27 = vld [vmem:[#allocation2 + $0x38] sm:$0xff] }
0x2fab   :  { %2700 = vmatmul.mubr.msk.f32.gmra.mrb[30].mxu0 %vm59_vm0, %v2131_v27 }
0x307e   :  { %v2701_v25 = vpop.f32.mrb[30].mxu0 }
0x307f   :  { %v2269_v31 = vadd.f32 %v2701_v25, %v3394_v26  ;;  %v2263_v1 = vpop.f32.mrb[31].mxu0 }
0x3080   :  { %v2264_v2 = vadd.f32 %v3394_v26, %v2263_v1 }
0x3081   :  { %2279 = vst [vmem:[%s3454_s7 + $0x38] sm:$0xff] %v2269_v31 }
0x3082   :  { %2278 = vst [vmem:[%s3454_s7 + $0x30] sm:$0xff] %v2264_v2 }
0x3083   :  { %2284 = vsyncpa [#allocation5], 1 }

</bundles_post_ra>
